<compile_context>
chip_gen: v7x
topology: tpu7x:2x2x1
jax: 0.10.0
libtpu: 0.0.40
codegen_flags: <defaults>
</compile_context>

<pallas_src>
import functools

import jax
import jax.numpy as jnp
from jax.experimental import pallas as pl
from jax.experimental.pallas import tpu as pltpu


# ----------------------------------------------------------------------------
# Pallas kernel: one batch element per grid step, everything lane-dense (HW).
# ----------------------------------------------------------------------------
def _inception_kernel(H, W, x_ref, hidx_ref, widx_ref,
                      wcat_ref, bcat_ref, w3_ref, b3_ref,
                      w5_ref, b5_ref, wp_ref, bp_ref, out_ref):
    f32 = jnp.float32
    bf16 = jnp.bfloat16
    HW = H * W

    x = x_ref[0]                           # (Cin, HW) f32
    h_idx = hidx_ref[...]                  # (1, HW) int32: row index of pixel
    w_idx = widx_ref[...]                  # (1, HW) int32: col index of pixel

    # Hoisted per-offset validity masks, reused by every tap (shape (1, HW)).
    hvalid = {d: (h_idx + d >= 0) & (h_idx + d < H) for d in range(-2, 3)}
    wvalid = {d: (w_idx + d >= 0) & (w_idx + d < W) for d in range(-2, 3)}

    def tap(t, dh, dw):
        # out[:, p] = t[:, (p + dh*W + dw) mod HW].  Wrapped values are garbage
        # but every caller masks with hvalid[dh] & wvalid[dw], which is False
        # exactly where the 2-D source pixel is out of bounds.
        s = dh * W + dw
        if s == 0:
            return t
        return pltpu.roll(t, (-s) % HW, 1)

    # ---- fused 1x1 convs over x: rows = [branch1x1(8) | 5x5_1(8) | 3x3_1(6)+2 pad]
    y = jnp.dot(wcat_ref[...], x.astype(bf16), preferred_element_type=f32)
    y = jnp.maximum(y + bcat_ref[...], 0.0)          # (24, HW) f32
    y1 = y[0:8]                                      # branch1x1 (bn1 folded)
    t5 = y[8:16]                                     # 5x5 branch intermediate
    t3 = y[16:24]                                    # 3x3 branch intermediate (last 2 rows 0)

    def im2col(t, k, pad):
        # Build the (k*k*C, HW) column matrix: each tap is a lane rotation of
        # the flattened image, zero-masked where the 2-D source is out of bounds.
        cols = []
        for dy in range(k):
            for dx in range(k):
                dh, dw = dy - pad, dx - pad
                m = hvalid[dh] & wvalid[dw]
                cols.append(jnp.where(m, tap(t, dh, dw), 0.0))
        return jnp.concatenate(cols, axis=0).astype(bf16)

    # ---- 3x3 branch: relu(bn2(conv3x3(t3))) as one matmul, K = 72 ----
    a3 = im2col(t3, 3, 1)                            # (72, HW) bf16
    y3 = jnp.dot(w3_ref[...], a3, preferred_element_type=f32)
    y3 = jnp.maximum(y3 + b3_ref[...], 0.0)          # (8, HW)

    # ---- 5x5 branch: relu(bn3(conv5x5(t5))) as one matmul, K = 200 ----
    a5 = im2col(t5, 5, 2)                            # (200, HW) bf16
    y5 = jnp.dot(w5_ref[...], a5, preferred_element_type=f32)
    y5 = jnp.maximum(y5 + b5_ref[...], 0.0)          # (12, HW)

    # ---- pool branch: separable 3x3 max pool (pad=-inf) then 1x1 conv ----
    neg = -jnp.inf
    mw = x
    for dw in (-1, 1):                               # max over the W direction
        mw = jnp.maximum(mw, jnp.where(wvalid[dw], tap(x, 0, dw), neg))
    m = mw
    for dh in (-1, 1):                               # max over the H direction
        m = jnp.maximum(m, jnp.where(hvalid[dh], tap(mw, dh, 0), neg))
    yp = jnp.dot(wp_ref[...], m.astype(bf16), preferred_element_type=f32)
    yp = jnp.maximum(yp + bp_ref[...], 0.0)          # (4, HW)

    # ---- fused output, channel order matches torch.cat([1x1, 3x3, 5x5, pool]) ----
    out_ref[0, 0:8, :] = y1
    out_ref[0, 8:16, :] = y3
    out_ref[0, 16:28, :] = y5
    out_ref[0, 28:32, :] = yp


# ----------------------------------------------------------------------------
# Wrapper: NCHW in/out, one pallas_call, grid over batch.
# ----------------------------------------------------------------------------
def tiny_inception_forward(x_nchw, kp):
    N, Cin, H, W = x_nchw.shape
    HW = H * W
    x = x_nchw.reshape(N, Cin, HW).astype(jnp.float32)   # free reshape (NCHW is channel-major)
    hw = jnp.arange(HW, dtype=jnp.int32)
    h_idx = (hw // W).reshape(1, HW)
    w_idx = (hw % W).reshape(1, HW)

    kernel = functools.partial(_inception_kernel, H, W)

    def full_spec(a):
        return pl.BlockSpec(a.shape, lambda n, _nd=a.ndim: (0,) * _nd)

    args = (x, h_idx, w_idx,
            kp['wcat'], kp['bcat'], kp['w3'], kp['b3'],
            kp['w5'], kp['b5'], kp['wp'], kp['bp'])
    in_specs = [pl.BlockSpec((1, Cin, HW), lambda n: (n, 0, 0))]
    in_specs += [full_spec(a) for a in args[1:]]

    out = pl.pallas_call(
        kernel,
        out_shape=jax.ShapeDtypeStruct((N, 32, HW), jnp.float32),
        grid=(N,),
        in_specs=in_specs,
        out_specs=pl.BlockSpec((1, 32, HW), lambda n: (n, 0, 0)),
        compiler_params=pltpu.CompilerParams(
            dimension_semantics=("parallel",)),
    )(*args)
    return out.reshape(N, 32, H, W)                       # NCHW, no transpose/concat


# ----------------------------------------------------------------------------
# Deterministic parameters + eval-mode BatchNorm folding.
# ----------------------------------------------------------------------------
def init_params(key, in_channels=3, eps=1e-5):
    keys = jax.random.split(key, 6)

    def b_init(c, base):
        return base + 0.01 * jnp.arange(c, dtype=jnp.float32)

    def bn_params(c, salt):
        gamma = 1.0 + 0.05 * jnp.arange(c, dtype=jnp.float32)
        beta = 0.02 * jnp.arange(c, dtype=jnp.float32) - 0.01 * salt
        mean = 0.03 * jnp.arange(c, dtype=jnp.float32) - 0.05
        var = 1.0 + 0.10 * jnp.arange(c, dtype=jnp.float32)
        return gamma, beta, mean, var

    def fold(w, b, bn):
        gamma, beta, mean, var = bn
        scale = gamma / jnp.sqrt(var + eps)
        return w * scale, (b - mean) * scale + beta

    C = in_channels
    w1 = 0.3 * jax.random.normal(keys[0], (C, 8), jnp.float32)
    b1 = b_init(8, 0.01)
    w1, b1 = fold(w1, b1, bn_params(8, 1))            # bn1

    w3a = 0.3 * jax.random.normal(keys[1], (C, 6), jnp.float32)
    b3a = b_init(6, 0.02)

    w3b = 0.3 * jax.random.normal(keys[2], (3, 3, 6, 8), jnp.float32)   # HWIO
    b3b = b_init(8, 0.03)
    w3b, b3b = fold(w3b, b3b, bn_params(8, 2))        # bn2

    w5a = 0.3 * jax.random.normal(keys[3], (C, 8), jnp.float32)
    b5a = b_init(8, 0.04)

    w5b = 0.3 * jax.random.normal(keys[4], (5, 5, 8, 12), jnp.float32)  # HWIO
    b5b = b_init(12, 0.05)
    w5b, b5b = fold(w5b, b5b, bn_params(12, 3))       # bn3

    wp = 0.3 * jax.random.normal(keys[5], (C, 4), jnp.float32)
    bp = b_init(4, 0.06)
    wp, bp = fold(wp, bp, bn_params(4, 4))            # bn4

    return dict(w1=w1, b1=b1, w3a=w3a, b3a=b3a, w3b=w3b, b3b=b3b,
                w5a=w5a, b5a=b5a, w5b=w5b, b5b=b5b, wp=wp, bp=bp)


def prep_kernel_params(p, in_channels=3):
    """Reshape/fuse parameters into the layouts the kernel consumes."""
    bf16, f32 = jnp.bfloat16, jnp.float32
    C = in_channels
    col = lambda v: v.reshape(-1, 1).astype(f32)

    # Fused 1x1 weight rows: [branch1x1 (8) | branch5x5_1 (8) | branch3x3_1 (6) | 2 zero rows]
    wcat = jnp.concatenate([p['w1'].T, p['w5a'].T, p['w3a'].T,
                            jnp.zeros((2, C), f32)], axis=0)          # (24, C)
    bcat = jnp.concatenate([p['b1'], p['b5a'], p['b3a'],
                            jnp.zeros((2,), f32)])                    # (24,)

    # 3x3: HWIO (3,3,6,8) -> (8,3,3,6) -> pad cin 6->8 -> (8, 72); row order = dy,dx,cin.
    w3 = jnp.transpose(p['w3b'], (3, 0, 1, 2))
    w3 = jnp.pad(w3, ((0, 0), (0, 0), (0, 0), (0, 2))).reshape(8, 72)

    # 5x5: HWIO (5,5,8,12) -> (12, 200).
    w5 = jnp.transpose(p['w5b'], (3, 0, 1, 2)).reshape(12, 200)

    return dict(wcat=wcat.astype(bf16), bcat=col(bcat),
                w3=w3.astype(bf16), b3=col(p['b3b']),
                w5=w5.astype(bf16), b5=col(p['b5b']),
                wp=p['wp'].T.astype(bf16), bp=col(p['bp']))


# ----------------------------------------------------------------------------
# Pure-JAX reference (same folded params) for a correctness sanity check.
# ----------------------------------------------------------------------------
def ref_forward(x_nchw, p):
    x = jnp.transpose(x_nchw, (0, 2, 3, 1)).astype(jnp.float32)
    relu = lambda v: jnp.maximum(v, 0.0)

    def conv1x1(x, w, b):
        return jnp.einsum('nhwc,cd->nhwd', x, w) + b.reshape(1, 1, 1, -1)

    def convk(x, w, b, pad):
        y = jax.lax.conv_general_dilated(
            x, w, (1, 1), [(pad, pad), (pad, pad)],
            dimension_numbers=('NHWC', 'HWIO', 'NHWC'))
        return y + b.reshape(1, 1, 1, -1)

    b1 = relu(conv1x1(x, p['w1'], p['b1']))
    b3 = relu(convk(relu(conv1x1(x, p['w3a'], p['b3a'])), p['w3b'], p['b3b'], 1))
    b5 = relu(convk(relu(conv1x1(x, p['w5a'], p['b5a'])), p['w5b'], p['b5b'], 2))
    mp = jax.lax.reduce_window(x, -jnp.inf, jax.lax.max,
                               (1, 3, 3, 1), (1, 1, 1, 1),
                               [(0, 0), (1, 1), (1, 1), (0, 0)])
    bpool = relu(conv1x1(mp, p['wp'], p['bp']))
    out = jnp.concatenate([b1, b3, b5, bpool], axis=-1)
    return jnp.transpose(out, (0, 3, 1, 2))


if __name__ == "__main__":
    key = jax.random.PRNGKey(0)
    pkey, xkey = jax.random.split(key)
    params = init_params(pkey, in_channels=3)
    kparams = prep_kernel_params(params, in_channels=3)

    # PyTorch-convention NCHW input: batch=2, channels=3, 16x16 spatial.
    x = jax.random.normal(xkey, (2, 3, 16, 16), jnp.float32)

    out = jax.jit(lambda a: tiny_inception_forward(a, kparams))(x)
    out = jax.block_until_ready(out)
    assert out.shape == (2, 32, 16, 16), out.shape

    ref = ref_forward(x, params)
    max_err = float(jnp.max(jnp.abs(out - ref)))
    assert jnp.allclose(out, ref, rtol=5e-2, atol=5e-2), max_err

    print("KERNEL_OK")
</pallas_src>

<mosaic_0001>
module attributes {stable_mosaic.version = 11 : i64} {
  func.func @_inception_kernel(%arg0: i32, %arg1: memref<1x3x256xf32, #tpu.memory_space<vmem>>, %arg2: memref<1x256xi32, #tpu.memory_space<vmem>>, %arg3: memref<1x256xi32, #tpu.memory_space<vmem>>, %arg4: memref<24x3xbf16, #tpu.memory_space<vmem>>, %arg5: memref<24x1xf32, #tpu.memory_space<vmem>>, %arg6: memref<8x72xbf16, #tpu.memory_space<vmem>>, %arg7: memref<8x1xf32, #tpu.memory_space<vmem>>, %arg8: memref<12x200xbf16, #tpu.memory_space<vmem>>, %arg9: memref<12x1xf32, #tpu.memory_space<vmem>>, %arg10: memref<4x3xbf16, #tpu.memory_space<vmem>>, %arg11: memref<4x1xf32, #tpu.memory_space<vmem>>, %arg12: memref<1x32x256xf32, #tpu.memory_space<vmem>>) attributes {dimension_semantics = [#tpu.dimension_semantics<parallel>], iteration_bounds = array<i64: 2>, scalar_prefetch = 0 : i64, scratch_operands = 0 : i64, tpu.core_type = #tpu.core_type<tc>, window_params = [{transform_indices = @transform_0, window_bounds = array<i64: 1, 3, 256>}, {pipeline_mode = #tpu.pipeline_mode<synchronous>, transform_indices = @transform_1, window_bounds = array<i64: 1, 256>}, {pipeline_mode = #tpu.pipeline_mode<synchronous>, transform_indices = @transform_2, window_bounds = array<i64: 1, 256>}, {pipeline_mode = #tpu.pipeline_mode<synchronous>, transform_indices = @transform_3, window_bounds = array<i64: 24, 3>}, {pipeline_mode = #tpu.pipeline_mode<synchronous>, transform_indices = @transform_4, window_bounds = array<i64: 24, 1>}, {pipeline_mode = #tpu.pipeline_mode<synchronous>, transform_indices = @transform_5, window_bounds = array<i64: 8, 72>}, {pipeline_mode = #tpu.pipeline_mode<synchronous>, transform_indices = @transform_6, window_bounds = array<i64: 8, 1>}, {pipeline_mode = #tpu.pipeline_mode<synchronous>, transform_indices = @transform_7, window_bounds = array<i64: 12, 200>}, {pipeline_mode = #tpu.pipeline_mode<synchronous>, transform_indices = @transform_8, window_bounds = array<i64: 12, 1>}, {pipeline_mode = #tpu.pipeline_mode<synchronous>, transform_indices = @transform_9, window_bounds = array<i64: 4, 3>}, {pipeline_mode = #tpu.pipeline_mode<synchronous>, transform_indices = @transform_10, window_bounds = array<i64: 4, 1>}, {transform_indices = @transform_11, window_bounds = array<i64: 1, 32, 256>}]} {
    %c0 = arith.constant 0 : index
    %c0_0 = arith.constant 0 : index
    %c0_1 = arith.constant 0 : index
    %0 = vector.load %arg1[%c0, %c0_0, %c0_1] : memref<1x3x256xf32, #tpu.memory_space<vmem>>, vector<1x3x256xf32>
    %1 = vector.shape_cast %0 : vector<1x3x256xf32> to vector<3x256xf32>
    %c0_2 = arith.constant 0 : index
    %c0_3 = arith.constant 0 : index
    %2 = vector.load %arg2[%c0_2, %c0_3] : memref<1x256xi32, #tpu.memory_space<vmem>>, vector<1x256xi32>
    %c0_4 = arith.constant 0 : index
    %c0_5 = arith.constant 0 : index
    %3 = vector.load %arg3[%c0_4, %c0_5] : memref<1x256xi32, #tpu.memory_space<vmem>>, vector<1x256xi32>
    %c-2_i32 = arith.constant -2 : i32
    %4 = vector.broadcast %c-2_i32 : i32 to vector<1x256xi32>
    %5 = arith.addi %2, %4 : vector<1x256xi32>
    %c0_i32 = arith.constant 0 : i32
    %6 = vector.broadcast %c0_i32 : i32 to vector<1x256xi32>
    %7 = arith.cmpi sge, %5, %6 : vector<1x256xi32>
    %c-2_i32_6 = arith.constant -2 : i32
    %8 = vector.broadcast %c-2_i32_6 : i32 to vector<1x256xi32>
    %9 = arith.addi %2, %8 : vector<1x256xi32>
    %c16_i32 = arith.constant 16 : i32
    %10 = vector.broadcast %c16_i32 : i32 to vector<1x256xi32>
    %11 = arith.cmpi slt, %9, %10 : vector<1x256xi32>
    %12 = arith.andi %7, %11 : vector<1x256xi1>
    %c-1_i32 = arith.constant -1 : i32
    %13 = vector.broadcast %c-1_i32 : i32 to vector<1x256xi32>
    %14 = arith.addi %2, %13 : vector<1x256xi32>
    %c0_i32_7 = arith.constant 0 : i32
    %15 = vector.broadcast %c0_i32_7 : i32 to vector<1x256xi32>
    %16 = arith.cmpi sge, %14, %15 : vector<1x256xi32>
    %c-1_i32_8 = arith.constant -1 : i32
    %17 = vector.broadcast %c-1_i32_8 : i32 to vector<1x256xi32>
    %18 = arith.addi %2, %17 : vector<1x256xi32>
    %c16_i32_9 = arith.constant 16 : i32
    %19 = vector.broadcast %c16_i32_9 : i32 to vector<1x256xi32>
    %20 = arith.cmpi slt, %18, %19 : vector<1x256xi32>
    %21 = arith.andi %16, %20 : vector<1x256xi1>
    %c0_i32_10 = arith.constant 0 : i32
    %22 = vector.broadcast %c0_i32_10 : i32 to vector<1x256xi32>
    %23 = arith.addi %2, %22 : vector<1x256xi32>
    %c0_i32_11 = arith.constant 0 : i32
    %24 = vector.broadcast %c0_i32_11 : i32 to vector<1x256xi32>
    %25 = arith.cmpi sge, %23, %24 : vector<1x256xi32>
    %c0_i32_12 = arith.constant 0 : i32
    %26 = vector.broadcast %c0_i32_12 : i32 to vector<1x256xi32>
    %27 = arith.addi %2, %26 : vector<1x256xi32>
    %c16_i32_13 = arith.constant 16 : i32
    %28 = vector.broadcast %c16_i32_13 : i32 to vector<1x256xi32>
    %29 = arith.cmpi slt, %27, %28 : vector<1x256xi32>
    %30 = arith.andi %25, %29 : vector<1x256xi1>
    %c1_i32 = arith.constant 1 : i32
    %31 = vector.broadcast %c1_i32 : i32 to vector<1x256xi32>
    %32 = arith.addi %2, %31 : vector<1x256xi32>
    %c0_i32_14 = arith.constant 0 : i32
    %33 = vector.broadcast %c0_i32_14 : i32 to vector<1x256xi32>
    %34 = arith.cmpi sge, %32, %33 : vector<1x256xi32>
    %c1_i32_15 = arith.constant 1 : i32
    %35 = vector.broadcast %c1_i32_15 : i32 to vector<1x256xi32>
    %36 = arith.addi %2, %35 : vector<1x256xi32>
    %c16_i32_16 = arith.constant 16 : i32
    %37 = vector.broadcast %c16_i32_16 : i32 to vector<1x256xi32>
    %38 = arith.cmpi slt, %36, %37 : vector<1x256xi32>
    %39 = arith.andi %34, %38 : vector<1x256xi1>
    %c2_i32 = arith.constant 2 : i32
    %40 = vector.broadcast %c2_i32 : i32 to vector<1x256xi32>
    %41 = arith.addi %2, %40 : vector<1x256xi32>
    %c0_i32_17 = arith.constant 0 : i32
    %42 = vector.broadcast %c0_i32_17 : i32 to vector<1x256xi32>
    %43 = arith.cmpi sge, %41, %42 : vector<1x256xi32>
    %c2_i32_18 = arith.constant 2 : i32
    %44 = vector.broadcast %c2_i32_18 : i32 to vector<1x256xi32>
    %45 = arith.addi %2, %44 : vector<1x256xi32>
    %c16_i32_19 = arith.constant 16 : i32
    %46 = vector.broadcast %c16_i32_19 : i32 to vector<1x256xi32>
    %47 = arith.cmpi slt, %45, %46 : vector<1x256xi32>
    %48 = arith.andi %43, %47 : vector<1x256xi1>
    %c-2_i32_20 = arith.constant -2 : i32
    %49 = vector.broadcast %c-2_i32_20 : i32 to vector<1x256xi32>
    %50 = arith.addi %3, %49 : vector<1x256xi32>
    %c0_i32_21 = arith.constant 0 : i32
    %51 = vector.broadcast %c0_i32_21 : i32 to vector<1x256xi32>
    %52 = arith.cmpi sge, %50, %51 : vector<1x256xi32>
    %c-2_i32_22 = arith.constant -2 : i32
    %53 = vector.broadcast %c-2_i32_22 : i32 to vector<1x256xi32>
    %54 = arith.addi %3, %53 : vector<1x256xi32>
    %c16_i32_23 = arith.constant 16 : i32
    %55 = vector.broadcast %c16_i32_23 : i32 to vector<1x256xi32>
    %56 = arith.cmpi slt, %54, %55 : vector<1x256xi32>
    %57 = arith.andi %52, %56 : vector<1x256xi1>
    %c-1_i32_24 = arith.constant -1 : i32
    %58 = vector.broadcast %c-1_i32_24 : i32 to vector<1x256xi32>
    %59 = arith.addi %3, %58 : vector<1x256xi32>
    %c0_i32_25 = arith.constant 0 : i32
    %60 = vector.broadcast %c0_i32_25 : i32 to vector<1x256xi32>
    %61 = arith.cmpi sge, %59, %60 : vector<1x256xi32>
    %c-1_i32_26 = arith.constant -1 : i32
    %62 = vector.broadcast %c-1_i32_26 : i32 to vector<1x256xi32>
    %63 = arith.addi %3, %62 : vector<1x256xi32>
    %c16_i32_27 = arith.constant 16 : i32
    %64 = vector.broadcast %c16_i32_27 : i32 to vector<1x256xi32>
    %65 = arith.cmpi slt, %63, %64 : vector<1x256xi32>
    %66 = arith.andi %61, %65 : vector<1x256xi1>
    %c0_i32_28 = arith.constant 0 : i32
    %67 = vector.broadcast %c0_i32_28 : i32 to vector<1x256xi32>
    %68 = arith.addi %3, %67 : vector<1x256xi32>
    %c0_i32_29 = arith.constant 0 : i32
    %69 = vector.broadcast %c0_i32_29 : i32 to vector<1x256xi32>
    %70 = arith.cmpi sge, %68, %69 : vector<1x256xi32>
    %c0_i32_30 = arith.constant 0 : i32
    %71 = vector.broadcast %c0_i32_30 : i32 to vector<1x256xi32>
    %72 = arith.addi %3, %71 : vector<1x256xi32>
    %c16_i32_31 = arith.constant 16 : i32
    %73 = vector.broadcast %c16_i32_31 : i32 to vector<1x256xi32>
    %74 = arith.cmpi slt, %72, %73 : vector<1x256xi32>
    %75 = arith.andi %70, %74 : vector<1x256xi1>
    %c1_i32_32 = arith.constant 1 : i32
    %76 = vector.broadcast %c1_i32_32 : i32 to vector<1x256xi32>
    %77 = arith.addi %3, %76 : vector<1x256xi32>
    %c0_i32_33 = arith.constant 0 : i32
    %78 = vector.broadcast %c0_i32_33 : i32 to vector<1x256xi32>
    %79 = arith.cmpi sge, %77, %78 : vector<1x256xi32>
    %c1_i32_34 = arith.constant 1 : i32
    %80 = vector.broadcast %c1_i32_34 : i32 to vector<1x256xi32>
    %81 = arith.addi %3, %80 : vector<1x256xi32>
    %c16_i32_35 = arith.constant 16 : i32
    %82 = vector.broadcast %c16_i32_35 : i32 to vector<1x256xi32>
    %83 = arith.cmpi slt, %81, %82 : vector<1x256xi32>
    %84 = arith.andi %79, %83 : vector<1x256xi1>
    %c2_i32_36 = arith.constant 2 : i32
    %85 = vector.broadcast %c2_i32_36 : i32 to vector<1x256xi32>
    %86 = arith.addi %3, %85 : vector<1x256xi32>
    %c0_i32_37 = arith.constant 0 : i32
    %87 = vector.broadcast %c0_i32_37 : i32 to vector<1x256xi32>
    %88 = arith.cmpi sge, %86, %87 : vector<1x256xi32>
    %c2_i32_38 = arith.constant 2 : i32
    %89 = vector.broadcast %c2_i32_38 : i32 to vector<1x256xi32>
    %90 = arith.addi %3, %89 : vector<1x256xi32>
    %c16_i32_39 = arith.constant 16 : i32
    %91 = vector.broadcast %c16_i32_39 : i32 to vector<1x256xi32>
    %92 = arith.cmpi slt, %90, %91 : vector<1x256xi32>
    %93 = arith.andi %88, %92 : vector<1x256xi1>
    %c0_40 = arith.constant 0 : index
    %c0_41 = arith.constant 0 : index
    %94 = vector.load %arg4[%c0_40, %c0_41] : memref<24x3xbf16, #tpu.memory_space<vmem>>, vector<24x3xbf16>
    %95 = arith.truncf %1 : vector<3x256xf32> to vector<3x256xbf16>
    %cst = arith.constant dense<0.000000e+00> : vector<24x256xf32>
    %96 = tpu.matmul %94, %95, %cst {dimension_numbers = #tpu.dot_dimension_numbers<[1], [0], [0], [1], [0, 0, 1, 1], [], []>} : vector<24x3xbf16>, vector<3x256xbf16>, vector<24x256xf32> -> vector<24x256xf32>
    %c0_42 = arith.constant 0 : index
    %c0_43 = arith.constant 0 : index
    %97 = vector.load %arg5[%c0_42, %c0_43] : memref<24x1xf32, #tpu.memory_space<vmem>>, vector<24x1xf32>
    %98 = vector.broadcast %97 : vector<24x1xf32> to vector<24x256xf32>
    %99 = arith.addf %96, %98 : vector<24x256xf32>
    %cst_44 = arith.constant 0.000000e+00 : f32
    %100 = vector.broadcast %cst_44 : f32 to vector<24x256xf32>
    %101 = arith.maximumf %99, %100 : vector<24x256xf32>
    %102 = vector.extract_strided_slice %101 {offsets = [0, 0], sizes = [8, 256], strides = [1, 1]} : vector<24x256xf32> to vector<8x256xf32>
    %103 = vector.extract_strided_slice %101 {offsets = [8, 0], sizes = [8, 256], strides = [1, 1]} : vector<24x256xf32> to vector<8x256xf32>
    %104 = vector.extract_strided_slice %101 {offsets = [16, 0], sizes = [8, 256], strides = [1, 1]} : vector<24x256xf32> to vector<8x256xf32>
    %105 = arith.andi %21, %66 : vector<1x256xi1>
    %c17_i32 = arith.constant 17 : i32
    %106 = tpu.dynamic_rotate %104 by %c17_i32 dim 1 : vector<8x256xf32>, i32 -> vector<8x256xf32>
    %cst_45 = arith.constant 0.000000e+00 : f32
    %107 = vector.shape_cast %105 : vector<1x256xi1> to vector<1x256xi1>
    %108 = vector.broadcast %107 : vector<1x256xi1> to vector<8x256xi1>
    %109 = vector.broadcast %cst_45 : f32 to vector<8x256xf32>
    %110 = arith.select %108, %106, %109 : vector<8x256xi1>, vector<8x256xf32>
    %111 = arith.andi %21, %75 : vector<1x256xi1>
    %c16_i32_46 = arith.constant 16 : i32
    %112 = tpu.dynamic_rotate %104 by %c16_i32_46 dim 1 : vector<8x256xf32>, i32 -> vector<8x256xf32>
    %cst_47 = arith.constant 0.000000e+00 : f32
    %113 = vector.shape_cast %111 : vector<1x256xi1> to vector<1x256xi1>
    %114 = vector.broadcast %113 : vector<1x256xi1> to vector<8x256xi1>
    %115 = vector.broadcast %cst_47 : f32 to vector<8x256xf32>
    %116 = arith.select %114, %112, %115 : vector<8x256xi1>, vector<8x256xf32>
    %117 = arith.andi %21, %84 : vector<1x256xi1>
    %c15_i32 = arith.constant 15 : i32
    %118 = tpu.dynamic_rotate %104 by %c15_i32 dim 1 : vector<8x256xf32>, i32 -> vector<8x256xf32>
    %cst_48 = arith.constant 0.000000e+00 : f32
    %119 = vector.shape_cast %117 : vector<1x256xi1> to vector<1x256xi1>
    %120 = vector.broadcast %119 : vector<1x256xi1> to vector<8x256xi1>
    %121 = vector.broadcast %cst_48 : f32 to vector<8x256xf32>
    %122 = arith.select %120, %118, %121 : vector<8x256xi1>, vector<8x256xf32>
    %123 = arith.andi %30, %66 : vector<1x256xi1>
    %c1_i32_49 = arith.constant 1 : i32
    %124 = tpu.dynamic_rotate %104 by %c1_i32_49 dim 1 : vector<8x256xf32>, i32 -> vector<8x256xf32>
    %cst_50 = arith.constant 0.000000e+00 : f32
    %125 = vector.shape_cast %123 : vector<1x256xi1> to vector<1x256xi1>
    %126 = vector.broadcast %125 : vector<1x256xi1> to vector<8x256xi1>
    %127 = vector.broadcast %cst_50 : f32 to vector<8x256xf32>
    %128 = arith.select %126, %124, %127 : vector<8x256xi1>, vector<8x256xf32>
    %129 = arith.andi %30, %75 : vector<1x256xi1>
    %cst_51 = arith.constant 0.000000e+00 : f32
    %130 = vector.shape_cast %129 : vector<1x256xi1> to vector<1x256xi1>
    %131 = vector.broadcast %130 : vector<1x256xi1> to vector<8x256xi1>
    %132 = vector.broadcast %cst_51 : f32 to vector<8x256xf32>
    %133 = arith.select %131, %104, %132 : vector<8x256xi1>, vector<8x256xf32>
    %134 = arith.andi %30, %84 : vector<1x256xi1>
    %c255_i32 = arith.constant 255 : i32
    %135 = tpu.dynamic_rotate %104 by %c255_i32 dim 1 : vector<8x256xf32>, i32 -> vector<8x256xf32>
    %cst_52 = arith.constant 0.000000e+00 : f32
    %136 = vector.shape_cast %134 : vector<1x256xi1> to vector<1x256xi1>
    %137 = vector.broadcast %136 : vector<1x256xi1> to vector<8x256xi1>
    %138 = vector.broadcast %cst_52 : f32 to vector<8x256xf32>
    %139 = arith.select %137, %135, %138 : vector<8x256xi1>, vector<8x256xf32>
    %140 = arith.andi %39, %66 : vector<1x256xi1>
    %c241_i32 = arith.constant 241 : i32
    %141 = tpu.dynamic_rotate %104 by %c241_i32 dim 1 : vector<8x256xf32>, i32 -> vector<8x256xf32>
    %cst_53 = arith.constant 0.000000e+00 : f32
    %142 = vector.shape_cast %140 : vector<1x256xi1> to vector<1x256xi1>
    %143 = vector.broadcast %142 : vector<1x256xi1> to vector<8x256xi1>
    %144 = vector.broadcast %cst_53 : f32 to vector<8x256xf32>
    %145 = arith.select %143, %141, %144 : vector<8x256xi1>, vector<8x256xf32>
    %146 = arith.andi %39, %75 : vector<1x256xi1>
    %c240_i32 = arith.constant 240 : i32
    %147 = tpu.dynamic_rotate %104 by %c240_i32 dim 1 : vector<8x256xf32>, i32 -> vector<8x256xf32>
    %cst_54 = arith.constant 0.000000e+00 : f32
    %148 = vector.shape_cast %146 : vector<1x256xi1> to vector<1x256xi1>
    %149 = vector.broadcast %148 : vector<1x256xi1> to vector<8x256xi1>
    %150 = vector.broadcast %cst_54 : f32 to vector<8x256xf32>
    %151 = arith.select %149, %147, %150 : vector<8x256xi1>, vector<8x256xf32>
    %152 = arith.andi %39, %84 : vector<1x256xi1>
    %c239_i32 = arith.constant 239 : i32
    %153 = tpu.dynamic_rotate %104 by %c239_i32 dim 1 : vector<8x256xf32>, i32 -> vector<8x256xf32>
    %cst_55 = arith.constant 0.000000e+00 : f32
    %154 = vector.shape_cast %152 : vector<1x256xi1> to vector<1x256xi1>
    %155 = vector.broadcast %154 : vector<1x256xi1> to vector<8x256xi1>
    %156 = vector.broadcast %cst_55 : f32 to vector<8x256xf32>
    %157 = arith.select %155, %153, %156 : vector<8x256xi1>, vector<8x256xf32>
    %158 = tpu.concatenate %110, %116, %122, %128, %133, %139, %145, %151, %157 in 0 : vector<8x256xf32>, vector<8x256xf32>, vector<8x256xf32>, vector<8x256xf32>, vector<8x256xf32>, vector<8x256xf32>, vector<8x256xf32>, vector<8x256xf32>, vector<8x256xf32> -> vector<72x256xf32>
    %159 = arith.truncf %158 : vector<72x256xf32> to vector<72x256xbf16>
    %c0_56 = arith.constant 0 : index
    %c0_57 = arith.constant 0 : index
    %160 = vector.load %arg6[%c0_56, %c0_57] : memref<8x72xbf16, #tpu.memory_space<vmem>>, vector<8x72xbf16>
    %cst_58 = arith.constant dense<0.000000e+00> : vector<8x256xf32>
    %161 = tpu.matmul %160, %159, %cst_58 {dimension_numbers = #tpu.dot_dimension_numbers<[1], [0], [0], [1], [0, 0, 1, 1], [], []>} : vector<8x72xbf16>, vector<72x256xbf16>, vector<8x256xf32> -> vector<8x256xf32>
    %c0_59 = arith.constant 0 : index
    %c0_60 = arith.constant 0 : index
    %162 = vector.load %arg7[%c0_59, %c0_60] : memref<8x1xf32, #tpu.memory_space<vmem>>, vector<8x1xf32>
    %163 = vector.broadcast %162 : vector<8x1xf32> to vector<8x256xf32>
    %164 = arith.addf %161, %163 : vector<8x256xf32>
    %cst_61 = arith.constant 0.000000e+00 : f32
    %165 = vector.broadcast %cst_61 : f32 to vector<8x256xf32>
    %166 = arith.maximumf %164, %165 : vector<8x256xf32>
    %167 = arith.andi %12, %57 : vector<1x256xi1>
    %c34_i32 = arith.constant 34 : i32
    %168 = tpu.dynamic_rotate %103 by %c34_i32 dim 1 : vector<8x256xf32>, i32 -> vector<8x256xf32>
    %cst_62 = arith.constant 0.000000e+00 : f32
    %169 = vector.shape_cast %167 : vector<1x256xi1> to vector<1x256xi1>
    %170 = vector.broadcast %169 : vector<1x256xi1> to vector<8x256xi1>
    %171 = vector.broadcast %cst_62 : f32 to vector<8x256xf32>
    %172 = arith.select %170, %168, %171 : vector<8x256xi1>, vector<8x256xf32>
    %173 = arith.andi %12, %66 : vector<1x256xi1>
    %c33_i32 = arith.constant 33 : i32
    %174 = tpu.dynamic_rotate %103 by %c33_i32 dim 1 : vector<8x256xf32>, i32 -> vector<8x256xf32>
    %cst_63 = arith.constant 0.000000e+00 : f32
    %175 = vector.shape_cast %173 : vector<1x256xi1> to vector<1x256xi1>
    %176 = vector.broadcast %175 : vector<1x256xi1> to vector<8x256xi1>
    %177 = vector.broadcast %cst_63 : f32 to vector<8x256xf32>
    %178 = arith.select %176, %174, %177 : vector<8x256xi1>, vector<8x256xf32>
    %179 = arith.andi %12, %75 : vector<1x256xi1>
    %c32_i32 = arith.constant 32 : i32
    %180 = tpu.dynamic_rotate %103 by %c32_i32 dim 1 : vector<8x256xf32>, i32 -> vector<8x256xf32>
    %cst_64 = arith.constant 0.000000e+00 : f32
    %181 = vector.shape_cast %179 : vector<1x256xi1> to vector<1x256xi1>
    %182 = vector.broadcast %181 : vector<1x256xi1> to vector<8x256xi1>
    %183 = vector.broadcast %cst_64 : f32 to vector<8x256xf32>
    %184 = arith.select %182, %180, %183 : vector<8x256xi1>, vector<8x256xf32>
    %185 = arith.andi %12, %84 : vector<1x256xi1>
    %c31_i32 = arith.constant 31 : i32
    %186 = tpu.dynamic_rotate %103 by %c31_i32 dim 1 : vector<8x256xf32>, i32 -> vector<8x256xf32>
    %cst_65 = arith.constant 0.000000e+00 : f32
    %187 = vector.shape_cast %185 : vector<1x256xi1> to vector<1x256xi1>
    %188 = vector.broadcast %187 : vector<1x256xi1> to vector<8x256xi1>
    %189 = vector.broadcast %cst_65 : f32 to vector<8x256xf32>
    %190 = arith.select %188, %186, %189 : vector<8x256xi1>, vector<8x256xf32>
    %191 = arith.andi %12, %93 : vector<1x256xi1>
    %c30_i32 = arith.constant 30 : i32
    %192 = tpu.dynamic_rotate %103 by %c30_i32 dim 1 : vector<8x256xf32>, i32 -> vector<8x256xf32>
    %cst_66 = arith.constant 0.000000e+00 : f32
    %193 = vector.shape_cast %191 : vector<1x256xi1> to vector<1x256xi1>
    %194 = vector.broadcast %193 : vector<1x256xi1> to vector<8x256xi1>
    %195 = vector.broadcast %cst_66 : f32 to vector<8x256xf32>
    %196 = arith.select %194, %192, %195 : vector<8x256xi1>, vector<8x256xf32>
    %197 = arith.andi %21, %57 : vector<1x256xi1>
    %c18_i32 = arith.constant 18 : i32
    %198 = tpu.dynamic_rotate %103 by %c18_i32 dim 1 : vector<8x256xf32>, i32 -> vector<8x256xf32>
    %cst_67 = arith.constant 0.000000e+00 : f32
    %199 = vector.shape_cast %197 : vector<1x256xi1> to vector<1x256xi1>
    %200 = vector.broadcast %199 : vector<1x256xi1> to vector<8x256xi1>
    %201 = vector.broadcast %cst_67 : f32 to vector<8x256xf32>
    %202 = arith.select %200, %198, %201 : vector<8x256xi1>, vector<8x256xf32>
    %203 = arith.andi %21, %66 : vector<1x256xi1>
    %c17_i32_68 = arith.constant 17 : i32
    %204 = tpu.dynamic_rotate %103 by %c17_i32_68 dim 1 : vector<8x256xf32>, i32 -> vector<8x256xf32>
    %cst_69 = arith.constant 0.000000e+00 : f32
    %205 = vector.shape_cast %203 : vector<1x256xi1> to vector<1x256xi1>
    %206 = vector.broadcast %205 : vector<1x256xi1> to vector<8x256xi1>
    %207 = vector.broadcast %cst_69 : f32 to vector<8x256xf32>
    %208 = arith.select %206, %204, %207 : vector<8x256xi1>, vector<8x256xf32>
    %209 = arith.andi %21, %75 : vector<1x256xi1>
    %c16_i32_70 = arith.constant 16 : i32
    %210 = tpu.dynamic_rotate %103 by %c16_i32_70 dim 1 : vector<8x256xf32>, i32 -> vector<8x256xf32>
    %cst_71 = arith.constant 0.000000e+00 : f32
    %211 = vector.shape_cast %209 : vector<1x256xi1> to vector<1x256xi1>
    %212 = vector.broadcast %211 : vector<1x256xi1> to vector<8x256xi1>
    %213 = vector.broadcast %cst_71 : f32 to vector<8x256xf32>
    %214 = arith.select %212, %210, %213 : vector<8x256xi1>, vector<8x256xf32>
    %215 = arith.andi %21, %84 : vector<1x256xi1>
    %c15_i32_72 = arith.constant 15 : i32
    %216 = tpu.dynamic_rotate %103 by %c15_i32_72 dim 1 : vector<8x256xf32>, i32 -> vector<8x256xf32>
    %cst_73 = arith.constant 0.000000e+00 : f32
    %217 = vector.shape_cast %215 : vector<1x256xi1> to vector<1x256xi1>
    %218 = vector.broadcast %217 : vector<1x256xi1> to vector<8x256xi1>
    %219 = vector.broadcast %cst_73 : f32 to vector<8x256xf32>
    %220 = arith.select %218, %216, %219 : vector<8x256xi1>, vector<8x256xf32>
    %221 = arith.andi %21, %93 : vector<1x256xi1>
    %c14_i32 = arith.constant 14 : i32
    %222 = tpu.dynamic_rotate %103 by %c14_i32 dim 1 : vector<8x256xf32>, i32 -> vector<8x256xf32>
    %cst_74 = arith.constant 0.000000e+00 : f32
    %223 = vector.shape_cast %221 : vector<1x256xi1> to vector<1x256xi1>
    %224 = vector.broadcast %223 : vector<1x256xi1> to vector<8x256xi1>
    %225 = vector.broadcast %cst_74 : f32 to vector<8x256xf32>
    %226 = arith.select %224, %222, %225 : vector<8x256xi1>, vector<8x256xf32>
    %227 = arith.andi %30, %57 : vector<1x256xi1>
    %c2_i32_75 = arith.constant 2 : i32
    %228 = tpu.dynamic_rotate %103 by %c2_i32_75 dim 1 : vector<8x256xf32>, i32 -> vector<8x256xf32>
    %cst_76 = arith.constant 0.000000e+00 : f32
    %229 = vector.shape_cast %227 : vector<1x256xi1> to vector<1x256xi1>
    %230 = vector.broadcast %229 : vector<1x256xi1> to vector<8x256xi1>
    %231 = vector.broadcast %cst_76 : f32 to vector<8x256xf32>
    %232 = arith.select %230, %228, %231 : vector<8x256xi1>, vector<8x256xf32>
    %233 = arith.andi %30, %66 : vector<1x256xi1>
    %c1_i32_77 = arith.constant 1 : i32
    %234 = tpu.dynamic_rotate %103 by %c1_i32_77 dim 1 : vector<8x256xf32>, i32 -> vector<8x256xf32>
    %cst_78 = arith.constant 0.000000e+00 : f32
    %235 = vector.shape_cast %233 : vector<1x256xi1> to vector<1x256xi1>
    %236 = vector.broadcast %235 : vector<1x256xi1> to vector<8x256xi1>
    %237 = vector.broadcast %cst_78 : f32 to vector<8x256xf32>
    %238 = arith.select %236, %234, %237 : vector<8x256xi1>, vector<8x256xf32>
    %239 = arith.andi %30, %75 : vector<1x256xi1>
    %cst_79 = arith.constant 0.000000e+00 : f32
    %240 = vector.shape_cast %239 : vector<1x256xi1> to vector<1x256xi1>
    %241 = vector.broadcast %240 : vector<1x256xi1> to vector<8x256xi1>
    %242 = vector.broadcast %cst_79 : f32 to vector<8x256xf32>
    %243 = arith.select %241, %103, %242 : vector<8x256xi1>, vector<8x256xf32>
    %244 = arith.andi %30, %84 : vector<1x256xi1>
    %c255_i32_80 = arith.constant 255 : i32
    %245 = tpu.dynamic_rotate %103 by %c255_i32_80 dim 1 : vector<8x256xf32>, i32 -> vector<8x256xf32>
    %cst_81 = arith.constant 0.000000e+00 : f32
    %246 = vector.shape_cast %244 : vector<1x256xi1> to vector<1x256xi1>
    %247 = vector.broadcast %246 : vector<1x256xi1> to vector<8x256xi1>
    %248 = vector.broadcast %cst_81 : f32 to vector<8x256xf32>
    %249 = arith.select %247, %245, %248 : vector<8x256xi1>, vector<8x256xf32>
    %250 = arith.andi %30, %93 : vector<1x256xi1>
    %c254_i32 = arith.constant 254 : i32
    %251 = tpu.dynamic_rotate %103 by %c254_i32 dim 1 : vector<8x256xf32>, i32 -> vector<8x256xf32>
    %cst_82 = arith.constant 0.000000e+00 : f32
    %252 = vector.shape_cast %250 : vector<1x256xi1> to vector<1x256xi1>
    %253 = vector.broadcast %252 : vector<1x256xi1> to vector<8x256xi1>
    %254 = vector.broadcast %cst_82 : f32 to vector<8x256xf32>
    %255 = arith.select %253, %251, %254 : vector<8x256xi1>, vector<8x256xf32>
    %256 = arith.andi %39, %57 : vector<1x256xi1>
    %c242_i32 = arith.constant 242 : i32
    %257 = tpu.dynamic_rotate %103 by %c242_i32 dim 1 : vector<8x256xf32>, i32 -> vector<8x256xf32>
    %cst_83 = arith.constant 0.000000e+00 : f32
    %258 = vector.shape_cast %256 : vector<1x256xi1> to vector<1x256xi1>
    %259 = vector.broadcast %258 : vector<1x256xi1> to vector<8x256xi1>
    %260 = vector.broadcast %cst_83 : f32 to vector<8x256xf32>
    %261 = arith.select %259, %257, %260 : vector<8x256xi1>, vector<8x256xf32>
    %262 = arith.andi %39, %66 : vector<1x256xi1>
    %c241_i32_84 = arith.constant 241 : i32
    %263 = tpu.dynamic_rotate %103 by %c241_i32_84 dim 1 : vector<8x256xf32>, i32 -> vector<8x256xf32>
    %cst_85 = arith.constant 0.000000e+00 : f32
    %264 = vector.shape_cast %262 : vector<1x256xi1> to vector<1x256xi1>
    %265 = vector.broadcast %264 : vector<1x256xi1> to vector<8x256xi1>
    %266 = vector.broadcast %cst_85 : f32 to vector<8x256xf32>
    %267 = arith.select %265, %263, %266 : vector<8x256xi1>, vector<8x256xf32>
    %268 = arith.andi %39, %75 : vector<1x256xi1>
    %c240_i32_86 = arith.constant 240 : i32
    %269 = tpu.dynamic_rotate %103 by %c240_i32_86 dim 1 : vector<8x256xf32>, i32 -> vector<8x256xf32>
    %cst_87 = arith.constant 0.000000e+00 : f32
    %270 = vector.shape_cast %268 : vector<1x256xi1> to vector<1x256xi1>
    %271 = vector.broadcast %270 : vector<1x256xi1> to vector<8x256xi1>
    %272 = vector.broadcast %cst_87 : f32 to vector<8x256xf32>
    %273 = arith.select %271, %269, %272 : vector<8x256xi1>, vector<8x256xf32>
    %274 = arith.andi %39, %84 : vector<1x256xi1>
    %c239_i32_88 = arith.constant 239 : i32
    %275 = tpu.dynamic_rotate %103 by %c239_i32_88 dim 1 : vector<8x256xf32>, i32 -> vector<8x256xf32>
    %cst_89 = arith.constant 0.000000e+00 : f32
    %276 = vector.shape_cast %274 : vector<1x256xi1> to vector<1x256xi1>
    %277 = vector.broadcast %276 : vector<1x256xi1> to vector<8x256xi1>
    %278 = vector.broadcast %cst_89 : f32 to vector<8x256xf32>
    %279 = arith.select %277, %275, %278 : vector<8x256xi1>, vector<8x256xf32>
    %280 = arith.andi %39, %93 : vector<1x256xi1>
    %c238_i32 = arith.constant 238 : i32
    %281 = tpu.dynamic_rotate %103 by %c238_i32 dim 1 : vector<8x256xf32>, i32 -> vector<8x256xf32>
    %cst_90 = arith.constant 0.000000e+00 : f32
    %282 = vector.shape_cast %280 : vector<1x256xi1> to vector<1x256xi1>
    %283 = vector.broadcast %282 : vector<1x256xi1> to vector<8x256xi1>
    %284 = vector.broadcast %cst_90 : f32 to vector<8x256xf32>
    %285 = arith.select %283, %281, %284 : vector<8x256xi1>, vector<8x256xf32>
    %286 = arith.andi %48, %57 : vector<1x256xi1>
    %c226_i32 = arith.constant 226 : i32
    %287 = tpu.dynamic_rotate %103 by %c226_i32 dim 1 : vector<8x256xf32>, i32 -> vector<8x256xf32>
    %cst_91 = arith.constant 0.000000e+00 : f32
    %288 = vector.shape_cast %286 : vector<1x256xi1> to vector<1x256xi1>
    %289 = vector.broadcast %288 : vector<1x256xi1> to vector<8x256xi1>
    %290 = vector.broadcast %cst_91 : f32 to vector<8x256xf32>
    %291 = arith.select %289, %287, %290 : vector<8x256xi1>, vector<8x256xf32>
    %292 = arith.andi %48, %66 : vector<1x256xi1>
    %c225_i32 = arith.constant 225 : i32
    %293 = tpu.dynamic_rotate %103 by %c225_i32 dim 1 : vector<8x256xf32>, i32 -> vector<8x256xf32>
    %cst_92 = arith.constant 0.000000e+00 : f32
    %294 = vector.shape_cast %292 : vector<1x256xi1> to vector<1x256xi1>
    %295 = vector.broadcast %294 : vector<1x256xi1> to vector<8x256xi1>
    %296 = vector.broadcast %cst_92 : f32 to vector<8x256xf32>
    %297 = arith.select %295, %293, %296 : vector<8x256xi1>, vector<8x256xf32>
    %298 = arith.andi %48, %75 : vector<1x256xi1>
    %c224_i32 = arith.constant 224 : i32
    %299 = tpu.dynamic_rotate %103 by %c224_i32 dim 1 : vector<8x256xf32>, i32 -> vector<8x256xf32>
    %cst_93 = arith.constant 0.000000e+00 : f32
    %300 = vector.shape_cast %298 : vector<1x256xi1> to vector<1x256xi1>
    %301 = vector.broadcast %300 : vector<1x256xi1> to vector<8x256xi1>
    %302 = vector.broadcast %cst_93 : f32 to vector<8x256xf32>
    %303 = arith.select %301, %299, %302 : vector<8x256xi1>, vector<8x256xf32>
    %304 = arith.andi %48, %84 : vector<1x256xi1>
    %c223_i32 = arith.constant 223 : i32
    %305 = tpu.dynamic_rotate %103 by %c223_i32 dim 1 : vector<8x256xf32>, i32 -> vector<8x256xf32>
    %cst_94 = arith.constant 0.000000e+00 : f32
    %306 = vector.shape_cast %304 : vector<1x256xi1> to vector<1x256xi1>
    %307 = vector.broadcast %306 : vector<1x256xi1> to vector<8x256xi1>
    %308 = vector.broadcast %cst_94 : f32 to vector<8x256xf32>
    %309 = arith.select %307, %305, %308 : vector<8x256xi1>, vector<8x256xf32>
    %310 = arith.andi %48, %93 : vector<1x256xi1>
    %c222_i32 = arith.constant 222 : i32
    %311 = tpu.dynamic_rotate %103 by %c222_i32 dim 1 : vector<8x256xf32>, i32 -> vector<8x256xf32>
    %cst_95 = arith.constant 0.000000e+00 : f32
    %312 = vector.shape_cast %310 : vector<1x256xi1> to vector<1x256xi1>
    %313 = vector.broadcast %312 : vector<1x256xi1> to vector<8x256xi1>
    %314 = vector.broadcast %cst_95 : f32 to vector<8x256xf32>
    %315 = arith.select %313, %311, %314 : vector<8x256xi1>, vector<8x256xf32>
    %316 = tpu.concatenate %172, %178, %184, %190, %196, %202, %208, %214, %220, %226, %232, %238, %243, %249, %255, %261 in 0 : vector<8x256xf32>, vector<8x256xf32>, vector<8x256xf32>, vector<8x256xf32>, vector<8x256xf32>, vector<8x256xf32>, vector<8x256xf32>, vector<8x256xf32>, vector<8x256xf32>, vector<8x256xf32>, vector<8x256xf32>, vector<8x256xf32>, vector<8x256xf32>, vector<8x256xf32>, vector<8x256xf32>, vector<8x256xf32> -> vector<128x256xf32>
    %317 = tpu.concatenate %267, %273, %279, %285, %291, %297, %303, %309, %315 in 0 : vector<8x256xf32>, vector<8x256xf32>, vector<8x256xf32>, vector<8x256xf32>, vector<8x256xf32>, vector<8x256xf32>, vector<8x256xf32>, vector<8x256xf32>, vector<8x256xf32> -> vector<72x256xf32>
    %318 = tpu.concatenate %316, %317 in 0 : vector<128x256xf32>, vector<72x256xf32> -> vector<200x256xf32>
    %319 = arith.truncf %318 : vector<200x256xf32> to vector<200x256xbf16>
    %c0_96 = arith.constant 0 : index
    %c0_97 = arith.constant 0 : index
    %320 = vector.load %arg8[%c0_96, %c0_97] : memref<12x200xbf16, #tpu.memory_space<vmem>>, vector<12x200xbf16>
    %cst_98 = arith.constant dense<0.000000e+00> : vector<12x256xf32>
    %321 = tpu.matmul %320, %319, %cst_98 {dimension_numbers = #tpu.dot_dimension_numbers<[1], [0], [0], [1], [0, 0, 1, 1], [], []>} : vector<12x200xbf16>, vector<200x256xbf16>, vector<12x256xf32> -> vector<12x256xf32>
    %c0_99 = arith.constant 0 : index
    %c0_100 = arith.constant 0 : index
    %322 = vector.load %arg9[%c0_99, %c0_100] : memref<12x1xf32, #tpu.memory_space<vmem>>, vector<12x1xf32>
    %323 = vector.broadcast %322 : vector<12x1xf32> to vector<12x256xf32>
    %324 = arith.addf %321, %323 : vector<12x256xf32>
    %cst_101 = arith.constant 0.000000e+00 : f32
    %325 = vector.broadcast %cst_101 : f32 to vector<12x256xf32>
    %326 = arith.maximumf %324, %325 : vector<12x256xf32>
    %c1_i32_102 = arith.constant 1 : i32
    %327 = tpu.dynamic_rotate %1 by %c1_i32_102 dim 1 : vector<3x256xf32>, i32 -> vector<3x256xf32>
    %cst_103 = arith.constant 0xFF800000 : f32
    %328 = vector.shape_cast %66 : vector<1x256xi1> to vector<1x256xi1>
    %329 = vector.broadcast %328 : vector<1x256xi1> to vector<3x256xi1>
    %330 = vector.broadcast %cst_103 : f32 to vector<3x256xf32>
    %331 = arith.select %329, %327, %330 : vector<3x256xi1>, vector<3x256xf32>
    %332 = arith.maximumf %1, %331 : vector<3x256xf32>
    %c255_i32_104 = arith.constant 255 : i32
    %333 = tpu.dynamic_rotate %1 by %c255_i32_104 dim 1 : vector<3x256xf32>, i32 -> vector<3x256xf32>
    %cst_105 = arith.constant 0xFF800000 : f32
    %334 = vector.shape_cast %84 : vector<1x256xi1> to vector<1x256xi1>
    %335 = vector.broadcast %334 : vector<1x256xi1> to vector<3x256xi1>
    %336 = vector.broadcast %cst_105 : f32 to vector<3x256xf32>
    %337 = arith.select %335, %333, %336 : vector<3x256xi1>, vector<3x256xf32>
    %338 = arith.maximumf %332, %337 : vector<3x256xf32>
    %c16_i32_106 = arith.constant 16 : i32
    %339 = tpu.dynamic_rotate %338 by %c16_i32_106 dim 1 : vector<3x256xf32>, i32 -> vector<3x256xf32>
    %cst_107 = arith.constant 0xFF800000 : f32
    %340 = vector.shape_cast %21 : vector<1x256xi1> to vector<1x256xi1>
    %341 = vector.broadcast %340 : vector<1x256xi1> to vector<3x256xi1>
    %342 = vector.broadcast %cst_107 : f32 to vector<3x256xf32>
    %343 = arith.select %341, %339, %342 : vector<3x256xi1>, vector<3x256xf32>
    %344 = arith.maximumf %338, %343 : vector<3x256xf32>
    %c240_i32_108 = arith.constant 240 : i32
    %345 = tpu.dynamic_rotate %338 by %c240_i32_108 dim 1 : vector<3x256xf32>, i32 -> vector<3x256xf32>
    %cst_109 = arith.constant 0xFF800000 : f32
    %346 = vector.shape_cast %39 : vector<1x256xi1> to vector<1x256xi1>
    %347 = vector.broadcast %346 : vector<1x256xi1> to vector<3x256xi1>
    %348 = vector.broadcast %cst_109 : f32 to vector<3x256xf32>
    %349 = arith.select %347, %345, %348 : vector<3x256xi1>, vector<3x256xf32>
    %350 = arith.maximumf %344, %349 : vector<3x256xf32>
    %c0_110 = arith.constant 0 : index
    %c0_111 = arith.constant 0 : index
    %351 = vector.load %arg10[%c0_110, %c0_111] : memref<4x3xbf16, #tpu.memory_space<vmem>>, vector<4x3xbf16>
    %352 = arith.truncf %350 : vector<3x256xf32> to vector<3x256xbf16>
    %cst_112 = arith.constant dense<0.000000e+00> : vector<4x256xf32>
    %353 = tpu.matmul %351, %352, %cst_112 {dimension_numbers = #tpu.dot_dimension_numbers<[1], [0], [0], [1], [0, 0, 1, 1], [], []>} : vector<4x3xbf16>, vector<3x256xbf16>, vector<4x256xf32> -> vector<4x256xf32>
    %c0_113 = arith.constant 0 : index
    %c0_114 = arith.constant 0 : index
    %354 = vector.load %arg11[%c0_113, %c0_114] : memref<4x1xf32, #tpu.memory_space<vmem>>, vector<4x1xf32>
    %355 = vector.broadcast %354 : vector<4x1xf32> to vector<4x256xf32>
    %356 = arith.addf %353, %355 : vector<4x256xf32>
    %cst_115 = arith.constant 0.000000e+00 : f32
    %357 = vector.broadcast %cst_115 : f32 to vector<4x256xf32>
    %358 = arith.maximumf %356, %357 : vector<4x256xf32>
    %c0_116 = arith.constant 0 : index
    %c0_117 = arith.constant 0 : index
    %c0_118 = arith.constant 0 : index
    %359 = vector.load %arg12[%c0_116, %c0_117, %c0_118] : memref<1x32x256xf32, #tpu.memory_space<vmem>>, vector<1x8x256xf32>
    %360 = vector.shape_cast %359 : vector<1x8x256xf32> to vector<8x256xf32>
    %361 = vector.shape_cast %102 : vector<8x256xf32> to vector<1x8x256xf32>
    tpu.vector_store %arg12[%c0_116, %c0_117, %c0_118], %361 {strides = array<i32>} : memref<1x32x256xf32, #tpu.memory_space<vmem>>, vector<1x8x256xf32>,
    %c0_119 = arith.constant 0 : index
    %c8 = arith.constant 8 : index
    %c0_120 = arith.constant 0 : index
    %362 = vector.load %arg12[%c0_119, %c8, %c0_120] : memref<1x32x256xf32, #tpu.memory_space<vmem>>, vector<1x8x256xf32>
    %363 = vector.shape_cast %362 : vector<1x8x256xf32> to vector<8x256xf32>
    %364 = vector.shape_cast %166 : vector<8x256xf32> to vector<1x8x256xf32>
    tpu.vector_store %arg12[%c0_119, %c8, %c0_120], %364 {strides = array<i32>} : memref<1x32x256xf32, #tpu.memory_space<vmem>>, vector<1x8x256xf32>,
    %c0_121 = arith.constant 0 : index
    %c16 = arith.constant 16 : index
    %c0_122 = arith.constant 0 : index
    %365 = vector.load %arg12[%c0_121, %c16, %c0_122] : memref<1x32x256xf32, #tpu.memory_space<vmem>>, vector<1x12x256xf32>
    %366 = vector.shape_cast %365 : vector<1x12x256xf32> to vector<12x256xf32>
    %367 = vector.shape_cast %326 : vector<12x256xf32> to vector<1x12x256xf32>
    tpu.vector_store %arg12[%c0_121, %c16, %c0_122], %367 {strides = array<i32>} : memref<1x32x256xf32, #tpu.memory_space<vmem>>, vector<1x12x256xf32>,
    %c0_123 = arith.constant 0 : index
    %c28 = arith.constant 28 : index
    %c0_124 = arith.constant 0 : index
    %368 = vector.load %arg12[%c0_123, %c28, %c0_124] : memref<1x32x256xf32, #tpu.memory_space<vmem>>, vector<1x4x256xf32>
    %369 = vector.shape_cast %368 : vector<1x4x256xf32> to vector<4x256xf32>
    %370 = vector.shape_cast %358 : vector<4x256xf32> to vector<1x4x256xf32>
    tpu.vector_store %arg12[%c0_123, %c28, %c0_124], %370 {strides = array<i32>} : memref<1x32x256xf32, #tpu.memory_space<vmem>>, vector<1x4x256xf32>,
    return
  }
  func.func @transform_0(%arg0: i32) -> (i32, i32, i32) {
    %c0_i32 = arith.constant 0 : i32
    %c0_i32_0 = arith.constant 0 : i32
    %c0_i32_1 = arith.constant 0 : i32
    return %arg0, %c0_i32, %c0_i32_0 : i32, i32, i32
  }
  func.func @transform_1(%arg0: i32) -> (i32, i32) {
    %c0_i32 = arith.constant 0 : i32
    %c0_i32_0 = arith.constant 0 : i32
    %c0_i32_1 = arith.constant 0 : i32
    return %c0_i32, %c0_i32_0 : i32, i32
  }
  func.func @transform_2(%arg0: i32) -> (i32, i32) {
    %c0_i32 = arith.constant 0 : i32
    %c0_i32_0 = arith.constant 0 : i32
    %c0_i32_1 = arith.constant 0 : i32
    return %c0_i32, %c0_i32_0 : i32, i32
  }
  func.func @transform_3(%arg0: i32) -> (i32, i32) {
    %c0_i32 = arith.constant 0 : i32
    %c0_i32_0 = arith.constant 0 : i32
    %c0_i32_1 = arith.constant 0 : i32
    return %c0_i32, %c0_i32_0 : i32, i32
  }
  func.func @transform_4(%arg0: i32) -> (i32, i32) {
    %c0_i32 = arith.constant 0 : i32
    %c0_i32_0 = arith.constant 0 : i32
    %c0_i32_1 = arith.constant 0 : i32
    return %c0_i32, %c0_i32_0 : i32, i32
  }
  func.func @transform_5(%arg0: i32) -> (i32, i32) {
    %c0_i32 = arith.constant 0 : i32
    %c0_i32_0 = arith.constant 0 : i32
    %c0_i32_1 = arith.constant 0 : i32
    return %c0_i32, %c0_i32_0 : i32, i32
  }
  func.func @transform_6(%arg0: i32) -> (i32, i32) {
    %c0_i32 = arith.constant 0 : i32
    %c0_i32_0 = arith.constant 0 : i32
    %c0_i32_1 = arith.constant 0 : i32
    return %c0_i32, %c0_i32_0 : i32, i32
  }
  func.func @transform_7(%arg0: i32) -> (i32, i32) {
    %c0_i32 = arith.constant 0 : i32
    %c0_i32_0 = arith.constant 0 : i32
    %c0_i32_1 = arith.constant 0 : i32
    return %c0_i32, %c0_i32_0 : i32, i32
  }
  func.func @transform_8(%arg0: i32) -> (i32, i32) {
    %c0_i32 = arith.constant 0 : i32
    %c0_i32_0 = arith.constant 0 : i32
    %c0_i32_1 = arith.constant 0 : i32
    return %c0_i32, %c0_i32_0 : i32, i32
  }
  func.func @transform_9(%arg0: i32) -> (i32, i32) {
    %c0_i32 = arith.constant 0 : i32
    %c0_i32_0 = arith.constant 0 : i32
    %c0_i32_1 = arith.constant 0 : i32
    return %c0_i32, %c0_i32_0 : i32, i32
  }
  func.func @transform_10(%arg0: i32) -> (i32, i32) {
    %c0_i32 = arith.constant 0 : i32
    %c0_i32_0 = arith.constant 0 : i32
    %c0_i32_1 = arith.constant 0 : i32
    return %c0_i32, %c0_i32_0 : i32, i32
  }
  func.func @transform_11(%arg0: i32) -> (i32, i32, i32) {
    %c0_i32 = arith.constant 0 : i32
    %c0_i32_0 = arith.constant 0 : i32
    %c0_i32_1 = arith.constant 0 : i32
    return %arg0, %c0_i32, %c0_i32_0 : i32, i32, i32
  }
}

</mosaic_0001>

<bundles_post_ra>
// kernel: _lambda_.1
= control target key start
LH: loop header
LB: loop body
LE: loop exit
PB: predicated region body
PF: predicated region fallthrough
CT: control target
= control target key end

     0   :  { %s1949_s17 = smov 0   ;;  %s3184_s0 = inlined_call_operand.vmem [shape: f32[2,3,256], index: 0, kind: input, shape index: {}]   ;;  %s3185_s1 = inlined_call_operand.vmem [shape: s32[1,256], index: 1, kind: input, shape index: {}]   ;;  %s3186_s2 = inlined_call_operand.vmem [shape: s32[1,256], index: 2, kind: input, shape index: {}]   ;;  %s3187_s3 = inlined_call_operand.vmem [shape: bf16[24,3], index: 3, kind: input, shape index: {}]   ;;  %s3188_s4 = inlined_call_operand.vmem [shape: f32[24,1], index: 4, kind: input, shape index: {}]   ;;  %s3189_s5 = inlined_call_operand.vmem [shape: bf16[8,72], index: 5, kind: input, shape index: {}]   ;;  %s3190_s6 = inlined_call_operand.vmem [shape: f32[8,1], index: 6, kind: input, shape index: {}]   ;;  %s3191_s7 = inlined_call_operand.vmem [shape: bf16[12,200], index: 7, kind: input, shape index: {}]   ;;  %s3192_s8 = inlined_call_operand.vmem [shape: f32[12,1], index: 8, kind: input, shape index: {}]   ;;  %s3193_s9 = inlined_call_operand.vmem [shape: bf16[4,3], index: 9, kind: input, shape index: {}]   ;;  %s3194_s10 = inlined_call_operand.vmem [shape: f32[4,1], index: 10, kind: input, shape index: {}]   ;;  %s3195_s11 = inlined_call_operand.vmem [shape: f32[2,32,256], index: 11, kind: output, shape index: {}]  }
   0x1 LB: > { %s1533_s18 = sadd.s32 4294967295, %s1861_s17   ;;  %p1537_p0 = scmp.ge.s32.totalorder %s1861_s17, 1  ;;  %s1861_s17 = sphi %s1949_s17, %s21_s17  }
   0x2   : > { %p337_p1 = scmp.lt.s32.totalorder %s1861_s17, 3 }
   0x4   : > { %p338_p2 = pnand %p1537_p0, %p337_p1 }
   0x5   : > { %v438_v0 = vld [vmem:[%s3188_s4 + $0x8] sm:$0xff] (!%p338_p2)  ;;  %p377_p3 = scmp.lt.s32.totalorder (!%p338_p2), %s1533_s18, 1  ;;  %v1863_v1 = vmov (!%p338_p2), 0   ;;  %vm470_vm0 = vcmask (!%p338_p2), 1040384   ;;  %v439_v2 = vld [vmem:[%s3188_s4 + $0x10] sm:$0xff] (!%p338_p2)  ;;  %vm471_vm1 = vcmask (!%p338_p2), 1041408   ;;  %v542_v16 = vlaneseq (!%p338_p2) }
   0x6   : > { %341 = sbr.rel (%p338_p2) target bundleno = 683 (0x2ab), region = 64  ;;  %1687 = vset.pattern.permute.xlu0 (!%p338_p2), %v1863_v1  ;;  %512 = vmatprep.mubr.bf16.mxu1 (!%p338_p2), %v1863_v1  ;;  %v1864_v3 = vmov (!%p338_p2), 65535   ;;  %s1865_s27 = smov (!%p338_p2), 1   ;;  %v1850_v12 = vld [vmem:[%s3187_s3] sm:$0xff] (!%p338_p2)   ;;  %vm3196_vm2 = vcmask (!%p338_p2), 23552   ;;  %v3252_v18 = vmov (!%p338_p2), 0 }
   0x7   : > { %447 = vperm.xlu0 (!%p338_p2), %1687, %v438_v0   ;;  %1848 = vset.pattern.permute.xlu1 (!%p338_p2), %v1863_v1  ;;  %v472_v4 = vsel (!%p338_p2), %vm470_vm0, 4294967295, %v1864_v3  ;;  %s1866_s28 = smov (!%p338_p2), 127   ;;  %v1851_v13 = vld [vmem:[%s3187_s3 + $0x8] ss:$0 sps:$4 sm:$0xff] (!%p338_p2)   ;;  %v2001_v14 = vld [vmem:[%s3186_s2] sm:$0x3] (!%p338_p2) }
   0x8   : > { %v1976_v7 = vsel (!%p338_p2), %vm471_vm1, %v472_v4, 0  ;;  %v414_v15 = vadd.s32 (!%p338_p2), 4294967295, %v2001_v14  ;;  %v549_v17 = vshrl.u32 (!%p338_p2), %v542_v16, 7  ;;  %v421_v19 = vadd.s32 (!%p338_p2), 1, %v2001_v14  ;;  %s1867_s16 = smov (!%p338_p2), 112   ;;  %s1868_s19 = smov (!%p338_p2), 16  }
   0x9   : > { %v2013_v23 = vand.u32 (!%p338_p2), 127, %v542_v16  ;;  %v3254_v27 = vmov (!%p338_p2), 0  ;;  %s1869_s20 = smov (!%p338_p2), 33   ;;  %s1870_s21 = smov (!%p338_p2), 34   ;;  %vm3197_vm15 = vcmask (!%p338_p2), 588800  }
   0xa   : > { %vm415_vm3 = vcmp.ge.s32.totalorder (!%p338_p2), %v414_v15, 0  ;;  %vm416_vm4 = vcmp.lt.s32.totalorder (!%p338_p2), %v414_v15, 16  ;;  %v2009_v20 = vsub.s32 (!%p338_p2), 0, %v549_v17  ;;  %v2011_v21 = vsub.s32 (!%p338_p2), 1, %v549_v17  ;;  %s1871_s22 = smov (!%p338_p2), 31   ;;  %s1873_s24 = smov (!%p338_p2), 18  }
   0xb   : > { %452 = vperm.xlu0 (!%p338_p2), %1687, %v439_v2   ;;  %vm2004_vm5 = vmand (!%p338_p2), %vm415_vm3, %vm416_vm4  ;;  %vm422_vm6 = vcmp.ge.s32.totalorder (!%p338_p2), %v421_v19, 0  ;;  %vm423_vm7 = vcmp.lt.s32.totalorder (!%p338_p2), %v421_v19, 16  ;;  %vm3199_vm8 = vcmp.lt.s32.totalorder (!%p338_p2), %v2013_v23, 1  ;;  %vm3198_vm12 = vcmp.lt.s32.totalorder (!%p338_p2), %v2013_v23, 127  ;;  %s1874_s25 = smov (!%p338_p2), 30   ;;  %s1876_s29 = smov (!%p338_p2), 14  }
   0xc   : > { %v3253_v18 = vsel (!%p338_p2), %vm2004_vm5, 4294967295, %v3252_v18  ;;  %v1305_v24 = vsel (!%p338_p2), %vm2004_vm5, 1, %v1863_v1  ;;  %vm2021_vm9 = vmand (!%p338_p2), %vm422_vm6, %vm423_vm7  ;;  %s1877_s30 = smov (!%p338_p2), 15   ;;  %s1878_s12 = smov (!%p338_p2), 2   ;;  %v410_v15 = vadd.s32 (!%p338_p2), 4294967294, %v2001_v14  ;;  %v3370_v19 = vmov (!%p338_p2), 0 }
   0xd   : > { %s3545_s18 = smov (!%p377_p3, %s1533_s18), 1  ;;  %v1309_v25 = vrot.slane %v1305_v24, %v2009_v20  ;;  %v1313_v26 = vrot.slane %v1305_v24, %v2011_v21  ;;  %v3255_v27 = vsel %vm2021_vm9, 4294967295, %v3254_v27  ;;  %v1329_v32 = vsel %vm2021_vm9, 1, %v1863_v1  ;;  %s1879_s13 = smov 126  }
   0xe   : > { %s1651_s23 = sshll.u32 %s3545_s18, 3  ;;  %v1333_v35 = vrot.slane %v1329_v32, %v2009_v20  ;;  %v1337_v36 = vrot.slane %v1329_v32, %v2011_v21  ;;  %s1880_s14 = smov 114   ;;  %v1854_v4 = vld [vmem:[%s3191_s7 + $0x4] ss:$8 sps:$4 sm:$0x3f]   ;;  %vm411_vm6 = vcmp.ge.s32.totalorder %v410_v15, 0 }
   0xf   : > { %s381_s26 = scalar_lea.vmem %s3184_s0, %s1651_s23  ;;  %vm1314_vm10 = vcmp.eq.s32.totalorder %v1309_v25, 1  ;;  %vm1315_vm11 = vcmp.eq.s32.totalorder %v1313_v26, 1  ;;  %s1872_s23 = smov 32   ;;  %1647 = vmatprep.mubr.msk.bf16.mxu0 %vm3197_vm15, %v1854_v4  ;;  %vm412_vm7 = vcmp.lt.s32.totalorder %v410_v15, 16  ;;  %vm419_vm15 = vcmp.lt.s32.totalorder %v2001_v14, 16 }
  0x10   : > { %v1972_v5 = vld [vmem:[%s381_s26] sm:$0x77]  ;;  %vm1338_vm13 = vcmp.eq.s32.totalorder %v1333_v35, 1  ;;  %vm1339_vm14 = vcmp.eq.s32.totalorder %v1337_v36, 1  ;;  %s1875_s26 = smov 17   ;;  %s1881_s15 = smov 110  }
  0x11   : > { %v433_v6 = vcombine.high %v1972_v5, %v1972_v5  ;;  %v435_v8 = vpack.c.bf16 %v1972_v5, %v1972_v5  ;;  %1299 = vrot.lane.b32.xlu1 %v1972_v5, %s1865_s27  ;;  %1323 = vrot.lane.b32.xlu0 %v1972_v5, %s1866_s28  ;;  %v3262_v24 = vmov 0  ;;  %v425_v25 = vadd.s32 2, %v2001_v14 }
  0x12   : > { %v3264_v26 = vmov 0  ;;  %v3266_v35 = vmov 0  ;;  %v3280_v4 = vmov 0 }
  0x13   : > { %v436_v9 = vpack.c.bf16 %v433_v6, %v433_v6  ;;  %v475_v10 = vand.u32 %v1976_v7, %v435_v8  ;;  %v732_v8 = vld [vmem:[%s3190_s6] sm:$0xff] }
  0x15   : > { %v478_v11 = vand.u32 %v1976_v7, %v436_v9  ;;  %1301 = vrot.lane.b32.xlu1 %v433_v6, %s1865_s27  ;;  %v1223_v9 = vld [vmem:[%s3192_s8 + $0x8] sm:$0xf] }
  0x17   : > { %480 = vmatprep.subr.bf16.mxu1 %v478_v11  ;;  %v2104_v11 = vld [vmem:[%s3185_s1] sm:$0x3] }
  0x18   : > { %481 = vmatpush1.bf16.msra.mxu1 %v475_v10  ;;  %v1222_v10 = vld [vmem:[%s3192_s8] sm:$0xff]  ;;  %v402_v16 = vadd.s32 1, %v2104_v11 }
  0x19   : > { %1325 = vrot.lane.b32.xlu1 %v433_v6, %s1866_s28  ;;  %v1404_v6 = vld [vmem:[%s3194_s10] sm:$0xf] }
  0x1b   : > { %1544 = vmatmul.mubr.msk.bf16.vlgmr.msra.gmra.mrb[0].mxu1 %vm3196_vm2, %v1850_v12  ;;  %v395_v12 = vadd.s32 4294967295, %v2104_v11 }
  0x1c   : > { %522 = vmatprep.mubr.bf16.mxu1 %v1863_v1 }
  0x1d   : > { %vm396_vm0 = vcmp.ge.s32.totalorder %v395_v12, 0  ;;  %vm397_vm1 = vcmp.lt.s32.totalorder %v395_v12, 16 }
  0x23   : > { %1545 = vmatmul.mubr.msk.bf16.gmra.mrb[4].mxu1 %vm3196_vm2, %v1851_v13  ;;  %v391_v13 = vadd.s32 4294967294, %v2104_v11  ;;  %vm418_vm2 = vcmp.ge.s32.totalorder %v2001_v14, 0 }
  0x24   : > { %781 = vmatprep.mubr.bf16.mxu1 %v1863_v1 }
  0x25   : > { %vm392_vm3 = vcmp.ge.s32.totalorder %v391_v13, 0  ;;  %vm393_vm4 = vcmp.lt.s32.totalorder %v391_v13, 16 }
  0x83   : > { %v1300_v22 = vpop.permute.xlu1 %1299 }
  0x86   : > { %v448_v31 = vpop.permute.xlu0 %447 }
  0x87   : > { %v1302_v28 = vpop.permute.xlu1 %1301 }
  0x88   : > { %v1303_v29 = vsel %vm3199_vm8, %v1300_v22, %v1302_v28  ;;  %v1304_v30 = vsel %vm3199_vm8, %v1302_v28, %v1300_v22  ;;  %v3260_v22 = vmov 0 }
  0x89   : > { %v1316_v33 = vsel %vm1314_vm10, %v1304_v30, -inf  ;;  %v1317_v34 = vsel %vm1315_vm11, %v1303_v29, -inf  ;;  %vm2110_vm10 = vmand %vm396_vm0, %vm397_vm1  ;;  %vm403_vm11 = vcmp.ge.s32.totalorder %v402_v16, 0 }
  0x8a   : > { %v453_v37 = vpop.permute.xlu0 %452  ;;  %v1320_v38 = vcombine.low %v1316_v33, %v1317_v34  ;;  %vm2129_vm0 = vmand %vm418_vm2, %vm419_vm15  ;;  %v1356_v28 = vsel %vm2110_vm10, 1, %v1863_v1  ;;  %vm426_vm15 = vcmp.ge.s32.totalorder %v425_v25, 0 }
  0x8b   : > { %v1326_v39 = vpop.permute.xlu1 %1325  ;;  %v3265_v26 = vsel %vm2129_vm0, 4294967295, %v3264_v26  ;;  %v1360_v29 = vrot.slane %v1356_v28, %v2009_v20  ;;  %v1364_v30 = vrot.slane %v1356_v28, %v2011_v21 }
  0x8c   : > { %v1322_v41 = vmax.f32 %v1972_v5, %v1320_v38  ;;  %v437_v5 = vld [vmem:[%s3188_s4] sm:$0xff] }
  0x8e   : > { %v1324_v40 = vpop.permute.xlu0 %1323 }
  0x8f   : > { %v1327_v42 = vsel %vm3198_vm12, %v1324_v40, %v1326_v39  ;;  %v1328_v43 = vsel %vm3198_vm12, %v1326_v39, %v1324_v40  ;;  %vm2120_vm12 = vmand %vm411_vm6, %vm412_vm7  ;;  %v3308_v40 = vmov 0 }
  0x90   : > { %v1340_v44 = vsel %vm1338_vm13, %v1327_v42, -inf  ;;  %v1341_v45 = vsel %vm1339_vm14, %v1328_v43, -inf  ;;  %vm404_vm13 = vcmp.lt.s32.totalorder %v402_v16, 16  ;;  %vm2114_vm14 = vmand %vm392_vm3, %vm393_vm4  ;;  %v3261_v22 = vsel %vm2120_vm12, 4294967295, %v3260_v22 }
  0x91   : > { %v1344_v46 = vcombine.low %v1340_v44, %v1341_v45  ;;  %vm2124_vm8 = vmand %vm403_vm11, %vm404_vm13  ;;  %vm427_vm4 = vcmp.lt.s32.totalorder %v425_v25, 16 }
  0x92   : > { %v3263_v24 = vsel %vm2124_vm8, 4294967295, %v3262_v24  ;;  %vm792_vm1 = vmand %vm2114_vm14, %vm2120_vm12  ;;  %v1380_v14 = vsel %vm2124_vm8, 1, %v1863_v1 }
  0x93   : > { %v2040_v47 = vmax.f32 %v1322_v41, %v1344_v46  ;;  %vm813_vm3 = vmand %vm2114_vm14, %vm2004_vm5  ;;  %v1384_v33 = vrot.slane %v1380_v14, %v2009_v20  ;;  %v1388_v34 = vrot.slane %v1380_v14, %v2011_v21  ;;  %v3272_v46 = vmov 0 }
  0x94   : > { %vm834_vm2 = vmand %vm2114_vm14, %vm2129_vm0  ;;  %v821_v32 = vsel %vm813_vm3, 1, %v1863_v1 }
  0x95   : > { %1374 = vrot.lane.b32.xlu1 %v2040_v47, %s1867_s16  ;;  %1350 = vrot.lane.b32.xlu0 %v2040_v47, %s1868_s19  ;;  %v1348_v48 = vcombine.high %v2040_v47, %v2040_v47  ;;  %vm855_vm6 = vmand %vm2114_vm14, %vm2021_vm9  ;;  %v842_v38 = vsel %vm834_vm2, 1, %v1863_v1  ;;  %v829_v42 = vrot.slane %v821_v32, %v2011_v21  ;;  %vm2182_vm2 = vcmp.eq.s32.totalorder %v1364_v30, 1 }
  0x96   : > { %vm2161_vm7 = vmand %vm426_vm15, %vm427_vm4  ;;  %v863_v39 = vsel %vm855_vm6, 1, %v1863_v1  ;;  %v825_v45 = vrot.slane %v821_v32, %v2009_v20  ;;  %vm2193_vm6 = vcmp.eq.s32.totalorder %v1384_v33, 1  ;;  %vm2197_vm13 = vcmp.eq.s32.totalorder %v1388_v34, 1 }
  0x97   : > { %v3267_v35 = vsel %vm2161_vm7, 4294967295, %v3266_v35  ;;  %vm897_vm11 = vmand %vm2110_vm10, %vm2120_vm12  ;;  %v3273_v46 = vsel %vm2193_vm6, 4294967295, %v3272_v46  ;;  %vm2225_vm15 = vcmp.eq.s32.totalorder %v829_v42, 1 }
  0x98   : > { %vm876_vm4 = vmand %vm2114_vm14, %vm2161_vm7  ;;  %vm2238_vm8 = vcmp.eq.s32.totalorder %v825_v45, 1 }
  0x99   : > { %1352 = vrot.lane.b32.xlu1 %v1348_v48, %s1868_s19  ;;  %1376 = vrot.lane.b32.xlu0 %v1348_v48, %s1867_s16  ;;  %v3274_v48 = vmov 0 }
  0x9a   : > { %v3275_v48 = vsel %vm2197_vm13, 4294967295, %v3274_v48  ;;  %vm3289_vm13 = vmand %vm2110_vm10, %vm2129_vm0 }
  0x9b   : > { %v2268_v16 = vsel %vm3289_vm13, 1, %v1863_v1  ;;  %vm3294_vm13 = vmand %vm2110_vm10, %vm2021_vm9 }
  0x9c   : > { %v2288_v14 = vsel %vm3294_vm13, 1, %v1863_v1 }
  0xee   : > { %v2050_v49 = vpop.f32.mrb[0].mxu1 }
  0xef   : > { %v2052_v50 = vpop.f32.mrb[1].mxu1 }
  0xf0   : > { %v518_v51 = vpop.f32.mrb[2].mxu1 }
  0xf1   : > { %v2054_v52 = vadd.f32 %v518_v51, %v448_v31  ;;  %v520_v53 = vpop.f32.mrb[3].mxu1  ;;  %v850_v51 = vrot.slane %v842_v38, %v2011_v21 }
  0xf2   : > { %v2056_v54 = vadd.f32 %v520_v53, %v448_v31  ;;  %v800_v31 = vsel %vm792_vm1, 1, %v1863_v1  ;;  %vm2172_vm1 = vcmp.eq.s32.totalorder %v1360_v29, 1  ;;  %v871_v53 = vrot.slane %v863_v39, %v2011_v21 }
  0xf3   : > { %v533_v55 = vmax.f32 %v2054_v52, 0.0  ;;  %v808_v41 = vrot.slane %v800_v31, %v2011_v21  ;;  %v804_v44 = vrot.slane %v800_v31, %v2009_v20 }
  0xf4   : > { %v534_v56 = vmax.f32 %v2056_v54, 0.0  ;;  %vm2248_vm3 = vcmp.eq.s32.totalorder %v871_v53, 1  ;;  %v3432_v54 = vmov 0 }
  0xf5   : > { %vm2220_vm6 = vcmp.eq.s32.totalorder %v808_v41, 1  ;;  %vm2234_vm14 = vcmp.eq.s32.totalorder %v804_v44, 1  ;;  %v597_v41 = vrot.slane %v2288_v14, %v2011_v21 }
  0xf6   : > { %v524_v57 = vpop.f32.mrb[4].mxu1  ;;  %v1693_v58 = vpack.i.bf16 %v534_v56, %v533_v55  ;;  %v3281_v4 = vsel %vm2234_vm14, 4294967295, %v3280_v4  ;;  %vm3298_vm14 = vcmp.lt.s32.totalorder %v2013_v23, 112 }
  0xf7   : > { %v526_v59 = vpop.f32.mrb[5].mxu1  ;;  %v2067_v62 = vadd.f32 %v524_v57, %v453_v37  ;;  %v905_v57 = vsel %vm897_vm11, 1, %v1863_v1  ;;  %vm3288_vm11 = vmand %vm2110_vm10, %vm2004_vm5 }
  0xf8   : > { %1694 = vrot.lane.b32.xlu1 %v1693_v58, %s1869_s20  ;;  %1689 = vrot.lane.b32.xlu0 %v1693_v58, %s1870_s21  ;;  %v528_v60 = vpop.f32.mrb[6].mxu1  ;;  %v2069_v63 = vadd.f32 %v526_v59, %v453_v37  ;;  %s1882_s20 = smov 113   ;;  %s1883_s21 = smov 111   ;;  %v913_v12 = vrot.slane %v905_v57, %v2011_v21  ;;  %v909_v13 = vrot.slane %v905_v57, %v2009_v20  ;;  %v2260_v15 = vsel %vm3288_vm11, 1, %v1863_v1  ;;  %vm3299_vm13 = vmmov %vm3298_vm14 }
  0xf9   : > { %v529_v61 = vpop.f32.mrb[7].mxu1  ;;  %v535_v0 = vmax.f32 %v2067_v62, 0.0  ;;  %v884_v60 = vsel %vm876_vm4, 1, %v1863_v1  ;;  %vm2244_vm4 = vcmp.eq.s32.totalorder %v850_v51, 1 }
  0xfa   : > { %v536_v2 = vmax.f32 %v2069_v63, 0.0  ;;  %v892_v25 = vrot.slane %v884_v60, %v2011_v21  ;;  %v888_v28 = vrot.slane %v884_v60, %v2009_v20 }
  0xfc   : > { %1704 = vrot.lane.b32.xlu1 %v1693_v58, %s1871_s22  ;;  %1699 = vrot.lane.b32.xlu0 %v1693_v58, %s1872_s23  ;;  %v1788_v3 = vpack.i.bf16 %v536_v2, %v535_v0  ;;  %s1884_s22 = smov 98   ;;  %s1885_s23 = smov 96  }
 0x100   : > { %1714 = vrot.lane.b32.xlu1 %v1693_v58, %s1873_s24  ;;  %1709 = vrot.lane.b32.xlu0 %v1693_v58, %s1874_s25  ;;  %s1886_s24 = smov 97  }
 0x104   : > { %1724 = vrot.lane.b32.xlu1 %v1693_v58, %s1868_s19  ;;  %1719 = vrot.lane.b32.xlu0 %v1693_v58, %s1875_s26 }
 0x107   : > { %v1375_v36 = vpop.permute.xlu1 %1374  ;;  %v1351_v37 = vpop.permute.xlu0 %1350 }
 0x108   : > { %1734 = vrot.lane.b32.xlu1 %v1693_v58, %s1876_s29  ;;  %1729 = vrot.lane.b32.xlu0 %v1693_v58, %s1877_s30  ;;  %s1887_s29 = smov 94  }
 0x10b   : > { %v1353_v61 = vpop.permute.xlu1 %1352 }
 0x10c   : > { %1744 = vrot.lane.b32.xlu1 %v1693_v58, %s1865_s27  ;;  %1739 = vrot.lane.b32.xlu0 %v1693_v58, %s1878_s12 }
 0x110   : > { %1754 = vrot.lane.b32.xlu1 %v1693_v58, %s1879_s13  ;;  %1749 = vrot.lane.b32.xlu0 %v1693_v58, %s1866_s28 }
 0x114   : > { %1769 = vrot.lane.b32.xlu1 %v1693_v58, %s1867_s16  ;;  %1759 = vrot.lane.b32.xlu0 %v1693_v58, %s1880_s14 }
 0x118   : > { %1779 = vrot.lane.b32.xlu1 %v1693_v58, %s1881_s15  ;;  %1764 = vrot.lane.b32.xlu0 %v1693_v58, %s1882_s20 }
 0x11c   : > { %1789 = vrot.lane.b32.xlu1 %v1788_v3, %s1868_s19  ;;  %1774 = vrot.lane.b32.xlu0 %v1693_v58, %s1883_s21 }
 0x120   : > { %1794 = vrot.lane.b32.xlu1 %v1788_v3, %s1877_s30  ;;  %1784 = vrot.lane.b32.xlu0 %v1788_v3, %s1875_s26  ;;  %s1888_s26 = smov 95  }
 0x124   : > { %1804 = vrot.lane.b32.xlu1 %v1788_v3, %s1866_s28  ;;  %1799 = vrot.lane.b32.xlu0 %v1788_v3, %s1865_s27  ;;  %s1652_s28 = sshll.u32 %s3545_s18, 6 }
 0x125   : > { %s3169_s12 = scalar_lea.vmem %s3195_s11, %s1652_s28 }
 0x128   : > { %1814 = vrot.lane.b32.xlu1 %v1788_v3, %s1867_s16  ;;  %1809 = vrot.lane.b32.xlu0 %v1788_v3, %s1882_s20 }
 0x12c   : > { %1819 = vrot.lane.b32.xlu1 %v1693_v58, %s1884_s22  ;;  %1824 = vrot.lane.b32.xlu0 %v1788_v3, %s1883_s21  ;;  %v1377_v3 = vpop.permute.xlu0 %1376 }
 0x12d   : > { %v1378_v32 = vsel %vm3298_vm14, %v1375_v36, %v1377_v3  ;;  %v1379_v33 = vsel %vm3299_vm13, %v1377_v3, %v1375_v36  ;;  %v551_v36 = vrot.slane %v2260_v15, %v2009_v20 }
 0x130   : > { %1834 = vrot.lane.b32.xlu1 %v1693_v58, %s1885_s23  ;;  %1829 = vrot.lane.b32.xlu0 %v1693_v58, %s1886_s24 }
 0x134   : > { %1844 = vrot.lane.b32.xlu1 %v1693_v58, %s1887_s29  ;;  %1839 = vrot.lane.b32.xlu0 %v1693_v58, %s1888_s26 }
 0x138   : > { %442 = vperm.xlu1 %1848, %v437_v5   ;;  %1407 = vperm.xlu0 %1687, %v1404_v6   ;;  %v3282_v5 = vmov 0  ;;  %v846_v6 = vrot.slane %v842_v38, %v2009_v20  ;;  %v555_v38 = vrot.slane %v2260_v15, %v2011_v21 }
 0x139   : > { %v3283_v5 = vsel %vm2238_vm8, 4294967295, %v3282_v5 }
 0x13a   : > { %vm2306_vm9 = vcmp.eq.s32.totalorder %v846_v6, 1 }
 0x13c   : > { %735 = vperm.xlu0 %1687, %v732_v8   ;;  %1226 = vperm.xlu1 %1848, %v1222_v10   ;;  %v867_v8 = vrot.slane %v863_v39, %v2009_v20  ;;  %v3286_v10 = vmov 0  ;;  %v572_v39 = vrot.slane %v2268_v16, %v2009_v20 }
 0x13d   : > { %v3287_v10 = vsel %vm2248_vm3, 4294967295, %v3286_v10  ;;  %vm3290_vm3 = vcmp.lt.s32.totalorder %v2104_v11, 16 }
 0x13e   : > { %vm2310_vm0 = vcmp.eq.s32.totalorder %v867_v8, 1  ;;  %v3312_v8 = vmov 0 }
 0x140   : > { %1231 = vperm.xlu0 %1687, %v1223_v9   ;;  %v3284_v9 = vmov 0 }
 0x141   : > { %v3285_v9 = vsel %vm2244_vm4, 4294967295, %v3284_v9  ;;  %vm3291_vm4 = vcmp.ge.s32.totalorder %v2104_v11, 0 }
 0x142   : > { %vm2274_vm8 = vmand %vm3291_vm4, %vm3290_vm3  ;;  %vm3296_vm4 = vcmp.lt.s32.totalorder %v2013_v23, 16 }
 0x143   : > { %vm3295_vm3 = vmand %vm2110_vm10, %vm2161_vm7  ;;  %v1354_v30 = vsel %vm3296_vm4, %v1351_v37, %v1353_v61  ;;  %vm2344_vm10 = vcmp.eq.s32.totalorder %v892_v25, 1 }
 0x144   : > { %v2296_v29 = vsel %vm3295_vm3, 1, %v1863_v1  ;;  %vm3297_vm11 = vmmov %vm3296_vm4  ;;  %v1368_v45 = vsel %vm2182_vm2, %v1354_v30, -inf  ;;  %vm3305_vm3 = vnez %v3275_v48  ;;  %v3310_v48 = vmov 0 }
 0x145   : > { %v1355_v31 = vsel %vm3297_vm11, %v1353_v61, %v1351_v37  ;;  %v576_v37 = vrot.slane %v2268_v16, %v2011_v21  ;;  %v958_v42 = vrot.slane %v2296_v29, %v2011_v21  ;;  %vm963_vm14 = vmand %vm2274_vm8, %vm2120_vm12  ;;  %vm3304_vm11 = vnez %v3273_v46 }
 0x146   : > { %v1367_v44 = vsel %vm2172_vm1, %v1355_v31, -inf  ;;  %v1391_v51 = vsel %vm3304_vm11, %v1378_v32, -inf  ;;  %v1392_v53 = vsel %vm3305_vm3, %v1379_v33, -inf  ;;  %v3306_v61 = vmov 0  ;;  %vm3314_vm13 = vmand %vm2274_vm8, %vm2004_vm5 }
 0x147   : > { %v3307_v61 = vsel %vm2344_vm10, 4294967295, %v3306_v61  ;;  %vm2348_vm1 = vcmp.eq.s32.totalorder %v913_v12, 1  ;;  %vm2356_vm11 = vcmp.eq.s32.totalorder %v888_v28, 1  ;;  %vm2360_vm3 = vcmp.eq.s32.totalorder %v909_v13, 1 }
 0x148   : > { %v3309_v40 = vsel %vm2348_vm1, 4294967295, %v3308_v40  ;;  %v3311_v48 = vsel %vm2356_vm11, 4294967295, %v3310_v48  ;;  %v3313_v8 = vsel %vm2360_vm3, 4294967295, %v3312_v8  ;;  %v593_v12 = vrot.slane %v2288_v14, %v2009_v20 }
 0x149   : > { %v954_v15 = vrot.slane %v2296_v29, %v2009_v20  ;;  %v2374_v16 = vsel %vm3314_vm13, 1, %v1863_v1  ;;  %v2382_v13 = vsel %vm963_vm14, 1, %v1863_v1  ;;  %vm3315_vm4 = vnez %v3265_v26 }
 0x14a   : > { %vm3316_vm3 = vcmp.lt.s32.totalorder %v2013_v23, 34  ;;  %vm3317_vm5 = vcmp.lt.s32.totalorder %v2013_v23, 33  ;;  %vm2396_vm1 = vcmp.eq.s32.totalorder %v555_v38, 1  ;;  %v3320_v30 = vmov 0 }
 0x14b   : > { %vm3318_vm13 = vmmov %vm3316_vm3  ;;  %v3321_v30 = vsel %vm2396_vm1, 4294967295, %v3320_v30  ;;  %vm2400_vm14 = vcmp.eq.s32.totalorder %v576_v37, 1  ;;  %v3322_v31 = vmov 0  ;;  %vm3324_vm2 = vnez %v3255_v27 }
 0x14c   : > { %vm3319_vm11 = vmmov %vm3317_vm5  ;;  %v3323_v31 = vsel %vm2400_vm14, 4294967295, %v3322_v31  ;;  %v2408_v32 = vcombine.low %v1367_v44, %v1368_v45  ;;  %v2410_v33 = vcombine.low %v1391_v51, %v1392_v53  ;;  %v3327_v44 = vmov 0 }
 0x14d   : > { %vm2421_vm1 = vcmp.eq.s32.totalorder %v572_v39, 1  ;;  %v3329_v45 = vmov 0  ;;  %vm3332_vm14 = vnez %v3285_v9  ;;  %vm3333_vm10 = vnez %v3287_v10 }
 0x14e   : > { %v3330_v45 = vsel %vm2421_vm1, 4294967295, %v3329_v45  ;;  %v979_v39 = vrot.slane %v2382_v13, %v2011_v21  ;;  %vm3334_vm1 = vmand %vm2274_vm8, %vm3315_vm4  ;;  %vm3338_vm12 = vcmp.lt.s32.totalorder %v2013_v23, 32 }
 0x14f   : > { %v2444_v58 = vsel %vm3334_vm1, 1, %v1863_v1  ;;  %vm3339_vm1 = vmmov %vm3338_vm12 }
 0x16a   : > { %v1695_v57 = vpop.permute.xlu1 %1694  ;;  %v1690_v60 = vpop.permute.xlu0 %1689 }
 0x16b   : > { %v1697_v43 = vunpack.i.h.bf16 %v1695_v57  ;;  %v1696_v46 = vunpack.i.l.bf16 %v1695_v57  ;;  %v1692_v3 = vunpack.i.h.bf16 %v1690_v60  ;;  %v1691_v6 = vunpack.i.l.bf16 %v1690_v60 }
 0x16d   : > { %v798_v25 = vsel %vm3316_vm3, %v1691_v6, %v1692_v3  ;;  %v819_v28 = vsel %vm3317_vm5, %v1696_v46, %v1697_v43  ;;  %v799_v14 = vsel %vm3318_vm13, %v1692_v3, %v1691_v6  ;;  %v820_v29 = vsel %vm3319_vm11, %v1697_v43, %v1696_v46  ;;  %vm3331_vm13 = vmpackc.low %vm2225_vm15, %vm2220_vm6 }
 0x16e   : > { %v1705_v57 = vpop.permute.xlu1 %1704  ;;  %v1700_v60 = vpop.permute.xlu0 %1699  ;;  %v1575_v43 = vpack.c.bf16 %v819_v28, %v798_v25  ;;  %vm3325_vm5 = vnez %v3281_v4  ;;  %vm3326_vm11 = vnez %v3283_v5  ;;  %v1578_v38 = vpack.c.bf16 %v820_v29, %v799_v14  ;;  %vm3335_vm15 = vmand %vm2274_vm8, %vm3324_vm2 }
 0x16f   : > { %v1707_v37 = vunpack.i.h.bf16 %v1705_v57  ;;  %v1706_v46 = vunpack.i.l.bf16 %v1705_v57  ;;  %v1702_v3 = vunpack.i.h.bf16 %v1700_v60  ;;  %v1701_v6 = vunpack.i.l.bf16 %v1700_v60  ;;  %vm3340_vm4 = vmpackc.low %vm3326_vm11, %vm3325_vm5 }
 0x170   : > { %vm2417_vm3 = vcmp.eq.s32.totalorder %v551_v36, 1  ;;  %1576 = vmatprep.subr.msk.bf16.mxu0 %vm3331_vm13, %v1575_v43  ;;  %v618_v36 = vrot.slane %v2374_v16, %v2011_v21  ;;  %v2452_v59 = vsel %vm3335_vm15, 1, %v1863_v1  ;;  %vm3336_vm6 = vcmp.lt.s32.totalorder %v2013_v23, 31  ;;  %vm3351_vm5 = vmpackc.low %vm3333_vm10, %vm3332_vm14 }
 0x171   : > { %v3328_v44 = vsel %vm2417_vm3, 4294967295, %v3327_v44  ;;  %v861_v51 = vsel %vm3336_vm6, %v1706_v46, %v1707_v37  ;;  %vm3337_vm13 = vmmov %vm3336_vm6  ;;  %v840_v25 = vsel %vm3338_vm12, %v1701_v6, %v1702_v3  ;;  %v841_v28 = vsel %vm3339_vm1, %v1702_v3, %v1701_v6  ;;  %1579 = vmatpush1.bf16.msk.msra.mxu0 %vm3340_vm4, %v1578_v38 }
 0x172   : > { %v862_v53 = vsel %vm3337_vm13, %v1707_v37, %v1706_v46  ;;  %vm2471_vm6 = vcmp.eq.s32.totalorder %v597_v41, 1  ;;  %v3341_v14 = vmov 0  ;;  %vm2475_vm13 = vcmp.eq.s32.totalorder %v958_v42, 1  ;;  %v1715_v60 = vpop.permute.xlu1 %1714  ;;  %v1710_v43 = vpop.permute.xlu0 %1709 }
 0x173   : > { %v3342_v14 = vsel %vm2471_vm6, 4294967295, %v3341_v14  ;;  %v3343_v29 = vmov 0  ;;  %v1373_v5 = vmax.f32 %v2040_v47, %v2408_v32  ;;  %v1581_v57 = vpack.c.bf16 %v861_v51, %v840_v25 }
 0x174   : > { %v3344_v29 = vsel %vm2475_vm13, 4294967295, %v3343_v29  ;;  %v1584_v4 = vpack.c.bf16 %v862_v53, %v841_v28  ;;  %v614_v41 = vrot.slane %v2374_v16, %v2009_v20  ;;  %v1717_v42 = vunpack.i.h.bf16 %v1715_v60 }
 0x175   : > { %v1716_v38 = vunpack.i.l.bf16 %v1715_v60  ;;  %v1712_v37 = vunpack.i.h.bf16 %v1710_v43  ;;  %v1711_v47 = vunpack.i.l.bf16 %v1710_v43  ;;  %vm2489_vm11 = vcmp.eq.s32.totalorder %v593_v12, 1  ;;  %1582 = vmatprep.subr.msk.bf16.mxu0 %vm3351_vm5, %v1581_v57  ;;  %vm3356_vm5 = vmpackc.low %vm2310_vm0, %vm2306_vm9 }
 0x176   : > { %v3345_v32 = vmov 0  ;;  %vm2493_vm1 = vcmp.eq.s32.totalorder %v954_v15, 1  ;;  %v3347_v46 = vmov 0  ;;  %vm3349_vm4 = vnez %v3261_v22  ;;  %1585 = vmatpush1.bf16.msk.msra.mxu0 %vm3356_vm5, %v1584_v4  ;;  %v1725_v17 = vpop.permute.xlu1 %1724  ;;  %v1720_v28 = vpop.permute.xlu0 %1719  ;;  %vm3365_vm5 = vmand %vm2274_vm8, %vm2161_vm7 }
 0x177   : > { %v3346_v32 = vsel %vm2489_vm11, 4294967295, %v3345_v32  ;;  %v3348_v46 = vsel %vm2493_vm1, 4294967295, %v3347_v46  ;;  %vm3350_vm12 = vnez %v3263_v24  ;;  %v975_v12 = vrot.slane %v2382_v13, %v2009_v20 }
 0x178   : > { %v632_v15 = vrot.slane %v2444_v58, %v2011_v21  ;;  %v653_v16 = vrot.slane %v2452_v59, %v2011_v21  ;;  %v628_v3 = vrot.slane %v2444_v58, %v2009_v20  ;;  %vm3352_vm15 = vcmp.lt.s32.totalorder %v2013_v23, 18 }
 0x179   : > { %v903_v6 = vsel %vm3352_vm15, %v1716_v38, %v1717_v42  ;;  %vm3353_vm1 = vmmov %vm3352_vm15  ;;  %vm3354_vm10 = vcmp.lt.s32.totalorder %v2013_v23, 30  ;;  %vm3357_vm11 = vnez %v3307_v61  ;;  %vm3358_vm2 = vnez %v3309_v40 }
 0x17a   : > { %v904_v9 = vsel %vm3353_vm1, %v1717_v42, %v1716_v38  ;;  %v882_v10 = vsel %vm3354_vm10, %v1711_v47, %v1712_v37  ;;  %vm3355_vm14 = vmmov %vm3354_vm10  ;;  %vm2531_vm13 = vcmp.eq.s32.totalorder %v618_v36, 1  ;;  %v3359_v58 = vmov 0 }
 0x17b   : > { %v883_v13 = vsel %vm3355_vm14, %v1712_v37, %v1711_v47  ;;  %v3360_v58 = vsel %vm2531_vm13, 4294967295, %v3359_v58  ;;  %vm2535_vm1 = vcmp.eq.s32.totalorder %v979_v39, 1  ;;  %v1587_v53 = vpack.c.bf16 %v903_v6, %v882_v10  ;;  %vm3366_vm15 = vmand %vm3350_vm12, %vm3349_vm4  ;;  %v1735_v37 = vpop.permute.xlu1 %1734  ;;  %v1730_v47 = vpop.permute.xlu0 %1729 }
 0x17c   : > { %v1590_v25 = vpack.c.bf16 %v904_v9, %v883_v13  ;;  %vm3363_vm9 = vnez %v3311_v48  ;;  %vm3364_vm0 = vnez %v3313_v8  ;;  %v2550_v34 = vsel %vm3365_vm5, 1, %v1863_v1  ;;  %vm3367_vm8 = vmpackc.low %vm3358_vm2, %vm3357_vm11 }
 0x17d   : > { %v2558_v36 = vsel %vm3366_vm15, 1, %v1863_v1  ;;  %v1727_v39 = vunpack.i.h.bf16 %v1725_v17  ;;  %v1726_v57 = vunpack.i.l.bf16 %v1725_v17  ;;  %v1722_v4 = vunpack.i.h.bf16 %v1720_v28  ;;  %1588 = vmatprep.subr.msk.bf16.mxu0 %vm3367_vm8, %v1587_v53  ;;  %vm3378_vm10 = vmpackc.low %vm3364_vm0, %vm3363_vm9 }
 0x17e   : > { %v1721_v60 = vunpack.i.l.bf16 %v1720_v28  ;;  %v2561_v43 = vmax.f32 %v1373_v5, %v2410_v33  ;;  %vm3368_vm5 = vnez %v3321_v30  ;;  %vm3369_vm14 = vnez %v3323_v31  ;;  %1591 = vmatpush1.bf16.msk.msra.mxu0 %vm3378_vm10, %v1590_v25 }
 0x17f   : > { %vm2572_vm15 = vcmp.eq.s32.totalorder %v614_v41, 1  ;;  %vm2576_vm4 = vcmp.eq.s32.totalorder %v975_v12, 1  ;;  %v3372_v42 = vmov 0  ;;  %v649_v40 = vrot.slane %v2452_v59, %v2009_v20 }
 0x180   : > { %v3371_v19 = vsel %vm2572_vm15, 4294967295, %v3370_v19  ;;  %v3373_v42 = vsel %vm2576_vm4, 4294967295, %v3372_v42  ;;  %vm3374_vm7 = vcmp.lt.s32.totalorder %v2013_v23, 16  ;;  %vm3376_vm11 = vcmp.lt.s32.totalorder %v2013_v23, 17 }
 0x181   : > { %v930_v61 = vsel %vm3374_vm7, %v1726_v57, %v1727_v39  ;;  %vm3375_vm2 = vmmov %vm3374_vm7  ;;  %v922_v5 = vsel %vm3376_vm11, %v1721_v60, %v1722_v4  ;;  %vm3379_vm15 = vnez %v3253_v18  ;;  %v3381_v8 = vmov 0 }
 0x182   : > { %v931_v33 = vsel %vm3375_vm2, %v1727_v39, %v1726_v57  ;;  %vm3377_vm8 = vmmov %vm3376_vm11  ;;  %v1593_v59 = vpack.c.bf16 %v930_v61, %v922_v5  ;;  %vm3380_vm2 = vnez %v3330_v45  ;;  %vm2607_vm9 = vcmp.eq.s32.totalorder %v653_v16, 1 }
 0x183   : > { %v923_v41 = vsel %vm3377_vm8, %v1722_v4, %v1721_v60  ;;  %vm2603_vm8 = vcmp.eq.s32.totalorder %v632_v15, 1  ;;  %v3383_v48 = vmov 0  ;;  %v1018_v12 = vrot.slane %v2550_v34, %v2011_v21  ;;  %vm3388_vm7 = vmpackc.low %vm3369_vm14, %vm3368_vm5  ;;  %v1745_v60 = vpop.permute.xlu1 %1744 }
 0x184   : > { %v1596_v38 = vpack.c.bf16 %v931_v33, %v923_v41  ;;  %v3382_v8 = vsel %vm2603_vm8, 4294967295, %v3381_v8  ;;  %v3384_v48 = vsel %vm2607_vm9, 4294967295, %v3383_v48  ;;  %v1039_v6 = vrot.slane %v2558_v36, %v2011_v21  ;;  %1594 = vmatprep.subr.msk.bf16.mxu0 %vm3388_vm7, %v1593_v59  ;;  %vm3392_vm7 = vmand %vm3350_vm12, %vm3379_vm15 }
 0x185   : > { %v1737_v9 = vunpack.i.h.bf16 %v1735_v37  ;;  %v1736_v10 = vunpack.i.l.bf16 %v1735_v37  ;;  %v1732_v13 = vunpack.i.h.bf16 %v1730_v47  ;;  %v1731_v53 = vunpack.i.l.bf16 %v1730_v47 }
 0x186   : > { %vm2615_vm0 = vcmp.eq.s32.totalorder %v628_v3, 1  ;;  %v3385_v25 = vmov 0  ;;  %vm3387_vm10 = vnez %v3265_v26  ;;  %vm3389_vm9 = vnez %v3344_v29 }
 0x187   : > { %v3386_v25 = vsel %vm2615_vm0, 4294967295, %v3385_v25  ;;  %vm2632_vm4 = vcmp.eq.s32.totalorder %v649_v40, 1  ;;  %v3390_v15 = vmov 0  ;;  %v1014_v16 = vrot.slane %v2550_v34, %v2009_v20  ;;  %v1740_v40 = vpop.permute.xlu0 %1739  ;;  %vm3404_vm0 = vmpackc.low %vm3389_vm9, %vm2471_vm6 }
 0x188   : > { %v3391_v15 = vsel %vm2632_vm4, 4294967295, %v3390_v15  ;;  %v1035_v3 = vrot.slane %v2558_v36, %v2009_v20  ;;  %v666_v17 = vsel %vm3392_vm7, 1, %v1863_v1  ;;  %vm3393_vm11 = vcmp.lt.s32.totalorder %v2013_v23, 14  ;;  %vm3397_vm4 = vmpackc.low %vm3380_vm2, %vm2417_vm3 }
 0x189   : > { %v948_v28 = vsel %vm3393_vm11, %v1736_v10, %v1737_v9  ;;  %vm3394_vm8 = vmmov %vm3393_vm11  ;;  %vm3395_vm5 = vcmp.lt.s32.totalorder %v2013_v23, 15  ;;  %1597 = vmatpush1.bf16.msk.msra.mxu0 %vm3397_vm4, %v1596_v38  ;;  %vm3398_vm15 = vnez %v3255_v27  ;;  %vm2669_vm3 = vcmp.eq.s32.totalorder %v1018_v12, 1 }
 0x18a   : > { %v949_v39 = vsel %vm3394_vm8, %v1737_v9, %v1736_v10  ;;  %v938_v57 = vsel %vm3395_vm5, %v1731_v53, %v1732_v13  ;;  %vm3396_vm14 = vmmov %vm3395_vm5  ;;  %vm3399_vm5 = vnez %v3346_v32  ;;  %v1747_v5 = vunpack.i.h.bf16 %v1745_v60 }
 0x18b   : > { %v939_v34 = vsel %vm3396_vm14, %v1732_v13, %v1731_v53  ;;  %vm700_vm11 = vmand %vm3350_vm12, %vm3398_vm15  ;;  %v1599_v36 = vpack.c.bf16 %v948_v28, %v938_v57  ;;  %vm3400_vm14 = vnez %v3348_v46  ;;  %v1746_v41 = vunpack.i.l.bf16 %v1745_v60  ;;  %v1755_v28 = vpop.permute.xlu1 %1754 }
 0x18c   : > { %v1602_v4 = vpack.c.bf16 %v949_v39, %v939_v34  ;;  %vm3403_vm4 = vmand %vm3350_vm12, %vm3387_vm10  ;;  %v1742_v59 = vunpack.i.h.bf16 %v1740_v40  ;;  %v1741_v38 = vunpack.i.l.bf16 %v1740_v40  ;;  %vm2688_vm8 = vcmp.eq.s32.totalorder %v1039_v6, 1  ;;  %v1750_v39 = vpop.permute.xlu0 %1749 }
 0x18d   : > { %v687_v33 = vsel %vm3403_vm4, 1, %v1863_v1  ;;  %1600 = vmatprep.subr.msk.bf16.mxu0 %vm3404_vm0, %v1599_v36  ;;  %v674_v47 = vrot.slane %v666_v17, %v2011_v21  ;;  %v670_v12 = vrot.slane %v666_v17, %v2009_v20  ;;  %v2700_v29 = vsel %vm700_vm11, 1, %v1863_v1  ;;  %vm3411_vm6 = vmpackc.low %vm3400_vm14, %vm3399_vm5 }
 0x18e   : > { %vm3407_vm9 = vcmp.lt.s32.totalorder %v2013_v23, 1  ;;  %vm3409_vm4 = vcmp.lt.s32.totalorder %v2013_v23, 2  ;;  %1603 = vmatpush1.bf16.msk.msra.mxu0 %vm3411_vm6, %v1602_v4  ;;  %vm3412_vm11 = vnez %v3267_v35  ;;  %vm2724_vm15 = vcmp.eq.s32.totalorder %v1014_v16, 1  ;;  %vm3419_vm14 = vmpackc.low %vm2531_vm13, %vm2535_vm1 }
 0x18f   : > { %v988_v9 = vsel %vm3407_vm9, %v1746_v41, %v1747_v5  ;;  %vm3408_vm0 = vmmov %vm3407_vm9  ;;  %v969_v10 = vsel %vm3409_vm4, %v1741_v38, %v1742_v59  ;;  %v695_v57 = vrot.slane %v687_v33, %v2011_v21  ;;  %v1752_v34 = vunpack.i.h.bf16 %v1750_v39 }
 0x190   : > { %v989_v6 = vsel %vm3408_vm0, %v1747_v5, %v1746_v41  ;;  %vm3410_vm7 = vmmov %vm3409_vm4  ;;  %v1605_v53 = vpack.c.bf16 %v988_v9, %v969_v10  ;;  %vm3413_vm0 = vnez %v3373_v42  ;;  %vm3414_vm4 = vnez %v3371_v19  ;;  %v1760_v9 = vpop.permute.xlu0 %1759 }
 0x191   : > { %v970_v13 = vsel %vm3410_vm7, %v1742_v59, %v1741_v38  ;;  %vm1068_vm9 = vmand %vm3350_vm12, %vm3412_vm11  ;;  %v1751_v36 = vunpack.i.l.bf16 %v1750_v39  ;;  %vm2729_vm6 = vcmp.eq.s32.totalorder %v1035_v3, 1  ;;  %v691_v60 = vrot.slane %v687_v33, %v2009_v20  ;;  %v1770_v38 = vpop.permute.xlu1 %1769 }
 0x192   : > { %v1608_v17 = vpack.c.bf16 %v989_v6, %v970_v13  ;;  %vm1607_vm7 = vmpackc.low %vm3414_vm4, %vm3413_vm0  ;;  %v1757_v42 = vunpack.i.h.bf16 %v1755_v28  ;;  %v1756_v40 = vunpack.i.l.bf16 %v1755_v28  ;;  %1606 = vmatprep.subr.msk.bf16.mxu0 %vm3419_vm14, %v1605_v53  ;;  %v716_v16 = vrot.slane %v2700_v29, %v2011_v21 }
 0x193   : > { %v1076_v3 = vsel %vm1068_vm9, 1, %v1863_v1  ;;  %vm3420_vm0 = vcmp.lt.s32.totalorder %v2013_v23, 127  ;;  %vm3422_vm1 = vnez %v3382_v8  ;;  %vm3423_vm14 = vnez %v3384_v48 }
 0x194   : > { %v998_v33 = vsel %vm3420_vm0, %v1751_v36, %v1752_v34  ;;  %vm3421_vm2 = vmmov %vm3420_vm0  ;;  %1609 = vmatpush1.bf16.msk.msra.mxu0 %vm1607_vm7, %v1608_v17  ;;  %vm2755_vm5 = vcmp.eq.s32.totalorder %v674_v47, 1  ;;  %vm2759_vm13 = vcmp.eq.s32.totalorder %v670_v12, 1  ;;  %v3426_v24 = vmov 0 }
 0x195   : > { %v999_v5 = vsel %vm3421_vm2, %v1752_v34, %v1751_v36  ;;  %v3427_v24 = vsel %vm2759_vm13, 4294967295, %v3426_v24  ;;  %v1614_v59 = vpack.c.bf16 %v998_v33, %v533_v55  ;;  %vm3428_vm12 = vnez %v3386_v25  ;;  %vm3436_vm9 = vmpackc.low %vm3423_vm14, %vm3422_vm1  ;;  %v1780_v34 = vpop.permute.xlu1 %1779  ;;  %v1765_v36 = vpop.permute.xlu0 %1764 }
 0x196   : > { %v1611_v41 = vpack.c.bf16 %v999_v5, %v534_v56  ;;  %vm3429_vm2 = vnez %v3391_v15  ;;  %vm2771_vm7 = vcmp.eq.s32.totalorder %v695_v57, 1  ;;  %v406_v12 = vadd.s32 2, %v2104_v11 }
 0x197   : > { %v1762_v6 = vunpack.i.h.bf16 %v1760_v9  ;;  %v1761_v10 = vunpack.i.l.bf16 %v1760_v9  ;;  %vm2776_vm0 = vcmp.eq.s32.totalorder %v691_v60, 1  ;;  %v1084_v52 = vrot.slane %v1076_v3, %v2011_v21 }
 0x198   : > { %v3433_v54 = vsel %vm2776_vm0, 4294967295, %v3432_v54  ;;  %vm3434_vm4 = vcmp.lt.s32.totalorder %v2013_v23, 126  ;;  %1612 = vmatprep.subr.msk.bf16.mxu0 %vm3436_vm9, %v1611_v41  ;;  %vm2790_vm11 = vcmp.eq.s32.totalorder %v716_v16, 1  ;;  %v712_v13 = vrot.slane %v2700_v29, %v2009_v20  ;;  %vm3441_vm9 = vmpackc.low %vm3429_vm2, %vm3428_vm12 }
 0x199   : > { %v1008_v55 = vsel %vm3434_vm4, %v1756_v40, %v1757_v42  ;;  %vm3435_vm10 = vmmov %vm3434_vm4  ;;  %v1772_v53 = vunpack.i.h.bf16 %v1770_v38  ;;  %v1771_v17 = vunpack.i.l.bf16 %v1770_v38  ;;  %vm3439_vm4 = vcmp.lt.s32.totalorder %v2013_v23, 114  ;;  %1615 = vmatpush1.bf16.msk.msra.mxu0 %vm3441_vm9, %v1614_v59 }
 0x19a   : > { %v1009_v56 = vsel %vm3435_vm10, %v1757_v42, %v1756_v40  ;;  %v1029_v28 = vsel %vm3439_vm4, %v1761_v10, %v1762_v6  ;;  %vm3440_vm10 = vmmov %vm3439_vm4  ;;  %v1767_v60 = vunpack.i.h.bf16 %v1765_v36  ;;  %v1766_v42 = vunpack.i.l.bf16 %v1765_v36 }
 0x19b   : > { %v1030_v39 = vsel %vm3440_vm10, %v1762_v6, %v1761_v10  ;;  %v1620_v57 = vpack.c.bf16 %v1029_v28, %v1008_v55  ;;  %vm2817_vm12 = vcmp.eq.s32.totalorder %v1084_v52, 1  ;;  %v1080_v16 = vrot.slane %v1076_v3, %v2009_v20  ;;  %vm3444_vm10 = vmpackc.low %vm2688_vm8, %vm2669_vm3  ;;  %v1790_v10 = vpop.permute.xlu1 %1789  ;;  %v1775_v52 = vpop.permute.xlu0 %1774 }
 0x19c   : > { %v1617_v29 = vpack.c.bf16 %v1030_v39, %v1009_v56  ;;  %v1782_v33 = vunpack.i.h.bf16 %v1780_v34  ;;  %v1781_v5 = vunpack.i.l.bf16 %v1780_v34  ;;  %v1400_v41 = vcombine.high %v2561_v43, %v2561_v43  ;;  %vm3449_vm8 = vmpackc.low %vm2729_vm6, %vm2724_vm15 }
 0x19d   : > { %vm3445_vm14 = vcmp.lt.s32.totalorder %v2013_v23, 112  ;;  %vm3447_vm4 = vcmp.lt.s32.totalorder %v2013_v23, 113  ;;  %vm3451_vm9 = vcmp.ge.s32.totalorder %v406_v12, 0  ;;  %v1777_v46 = vunpack.i.h.bf16 %v1775_v52 }
 0x19e   : > { %1618 = vmatprep.subr.msk.bf16.mxu0 %vm3444_vm10, %v1617_v29  ;;  %v1056_v3 = vsel %vm3445_vm14, %v1771_v17, %v1772_v53  ;;  %vm3446_vm1 = vmmov %vm3445_vm14  ;;  %v1048_v37 = vsel %vm3447_vm4, %v1766_v42, %v1767_v60  ;;  %vm3450_vm10 = vcmp.lt.s32.totalorder %v406_v12, 16  ;;  %v1776_v4 = vunpack.i.l.bf16 %v1775_v52 }
 0x19f   : > { %v1057_v59 = vsel %vm3446_vm1, %v1772_v53, %v1771_v17  ;;  %vm3448_vm3 = vmmov %vm3447_vm4  ;;  %1621 = vmatpush1.bf16.msk.msra.mxu0 %vm3449_vm8, %v1620_v57  ;;  %v1626_v6 = vpack.c.bf16 %v1056_v3, %v1048_v37  ;;  %vm2858_vm15 = vcmp.eq.s32.totalorder %v712_v13, 1  ;;  %v3454_v55 = vmov 0 }
 0x1a0   : > { %v1049_v61 = vsel %vm3448_vm3, %v1767_v60, %v1766_v42  ;;  %vm2849_vm2 = vmand %vm3451_vm9, %vm3450_vm10  ;;  %v3455_v55 = vsel %vm2858_vm15, 4294967295, %v3454_v55  ;;  %vm2862_vm6 = vcmp.eq.s32.totalorder %v1080_v16, 1  ;;  %vm3458_vm4 = vnez %v3267_v35  ;;  %v1795_v60 = vpop.permute.xlu1 %1794  ;;  %v1785_v42 = vpop.permute.xlu0 %1784 }
 0x1a1   : > { %v1623_v9 = vpack.c.bf16 %v1057_v59, %v1049_v61  ;;  %vm3459_vm3 = vcmp.lt.s32.totalorder %v2013_v23, 110  ;;  %vm3461_vm10 = vmpackc.low %vm2771_vm7, %vm2755_vm5  ;;  %vm3462_vm14 = vnez %v3261_v22  ;;  %v1403_v13 = vpack.c.bf16 %v1400_v41, %v1400_v41 }
 0x1a2   : > { %v1074_v56 = vsel %vm3459_vm3, %v1781_v5, %v1782_v33  ;;  %vm3460_vm8 = vmmov %vm3459_vm3  ;;  %v1792_v17 = vunpack.i.h.bf16 %v1790_v10  ;;  %v1791_v28 = vunpack.i.l.bf16 %v1790_v10  ;;  %vm3463_vm9 = vcmp.lt.s32.totalorder %v2013_v23, 111 }
 0x1a3   : > { %v1075_v53 = vsel %vm3460_vm8, %v1782_v33, %v1781_v5  ;;  %1624 = vmatprep.subr.msk.bf16.mxu0 %vm3461_vm10, %v1623_v9  ;;  %v1064_v39 = vsel %vm3463_vm9, %v1776_v4, %v1777_v46  ;;  %vm3464_vm3 = vmmov %vm3463_vm9  ;;  %vm3466_vm10 = vnez %v3253_v18  ;;  %v1402_v57 = vpack.c.bf16 %v2561_v43, %v2561_v43  ;;  %v1398_v43 = vld [vmem:[%s3193_s9] sm:$0x3] }
 0x1a4   : > { %v1065_v29 = vsel %vm3464_vm3, %v1777_v46, %v1776_v4  ;;  %vm3465_vm8 = vmpackc.low %vm2776_vm0, %vm2759_vm13  ;;  %v1632_v36 = vpack.c.bf16 %v1074_v56, %v1064_v39  ;;  %v1787_v16 = vunpack.i.h.bf16 %v1785_v42  ;;  %v1786_v33 = vunpack.i.l.bf16 %v1785_v42  ;;  %v1805_v10 = vpop.permute.xlu1 %1804  ;;  %v1800_v52 = vpop.permute.xlu0 %1799 }
 0x1a5   : > { %1627 = vmatpush1.bf16.msk.msra.mxu0 %vm3465_vm8, %v1626_v6  ;;  %vm1110_vm1 = vmand %vm2849_vm2, %vm3466_vm10  ;;  %v1629_v34 = vpack.c.bf16 %v1075_v53, %v1065_v29  ;;  %v1797_v41 = vunpack.i.h.bf16 %v1795_v60  ;;  %v1796_v3 = vunpack.i.l.bf16 %v1795_v60  ;;  %v2925_v59 = vand.u32 %v1403_v13, %v1976_v7 }
 0x1a6   : > { %vm1631_vm9 = vmpackc.low %vm2862_vm6, %vm2858_vm15  ;;  %v1118_v35 = vsel %vm1110_vm1, 1, %v1863_v1  ;;  %vm3472_vm10 = vcmp.lt.s32.totalorder %v2013_v23, 17  ;;  %v1807_v12 = vunpack.i.h.bf16 %v1805_v10  ;;  %v1806_v56 = vunpack.i.l.bf16 %v1805_v10 }
 0x1a7   : > { %vm3467_vm3 = vmand %vm2849_vm2, %vm3458_vm4  ;;  %vm3470_vm4 = vcmp.lt.s32.totalorder %v2013_v23, 16  ;;  %v545_v61 = vsel %vm3472_vm10, %v1786_v33, %v1787_v16  ;;  %v1802_v53 = vunpack.i.h.bf16 %v1800_v52  ;;  %v1801_v13 = vunpack.i.l.bf16 %v1800_v52 }
 0x1a8   : > { %v2908_v18 = vsel %vm3467_vm3, 1, %v1863_v1  ;;  %vm3468_vm8 = vmand %vm2849_vm2, %vm3462_vm14  ;;  %v566_v37 = vsel %vm3470_vm4, %v1791_v28, %v1792_v17  ;;  %vm3489_vm0 = vnez %v3346_v32  ;;  %v1815_v42 = vpop.permute.xlu1 %1814 }
 0x1a9   : > { %v2916_v5 = vsel %vm3468_vm8, 1, %v1863_v1  ;;  %vm3469_vm6 = vmpackc.low %vm2817_vm12, %vm2790_vm11  ;;  %vm3474_vm12 = vnez %v3265_v26  ;;  %v1547_v9 = vpack.c.bf16 %v566_v37, %v545_v61  ;;  %v1189_v46 = vrot.slane %v2908_v18, %v2011_v21 }
 0x1aa   : > { %1630 = vmatprep.subr.msk.bf16.mxu0 %vm3469_vm6, %v1629_v34  ;;  %vm3471_vm14 = vmmov %vm3470_vm4  ;;  %v1105_v4 = vrot.slane %v2916_v5, %v2011_v21  ;;  %vm3476_vm6 = vcmp.lt.s32.totalorder %v2013_v23, 15  ;;  %vm3477_vm4 = vnez %v3323_v31  ;;  %v1101_v39 = vrot.slane %v2916_v5, %v2009_v20 }
 0x1ab   : > { %v567_v22 = vsel %vm3471_vm14, %v1792_v17, %v1791_v28  ;;  %vm3473_vm3 = vmmov %vm3472_vm10  ;;  %1633 = vmatpush1.bf16.msk.msra.mxu0 %vm1631_vm9, %v1632_v36  ;;  %vm3475_vm9 = vnez %v3255_v27  ;;  %v587_v17 = vsel %vm3476_vm6, %v1796_v3, %v1797_v41  ;;  %vm3478_vm14 = vnez %v3321_v30 }
 0x1ac   : > { %v546_v40 = vsel %vm3473_vm3, %v1787_v16, %v1786_v33  ;;  %vm1131_vm1 = vmand %vm2849_vm2, %vm3474_vm12  ;;  %v1126_v28 = vrot.slane %v1118_v35, %v2011_v21  ;;  %vm3485_vm8 = vnez %v3328_v44  ;;  %vm3487_vm12 = vnez %v3342_v14  ;;  %v1810_v16 = vpop.permute.xlu0 %1809 }
 0x1ad   : > { %v1550_v6 = vpack.c.bf16 %v567_v22, %v546_v40  ;;  %vm3479_vm10 = vmpackc.low %vm3477_vm4, %vm3478_vm14  ;;  %v2963_v29 = vsel %vm1131_vm1, 1, %v1863_v1  ;;  %vm3482_vm4 = vcmp.lt.s32.totalorder %v2013_v23, 1  ;;  %vm3488_vm1 = vnez %v3360_v58 }
 0x1ae   : > { %1548 = vmatprep.subr.msk.bf16.mxu1 %vm3479_vm10, %v1547_v9  ;;  %vm3480_vm3 = vmmov %vm3476_vm6  ;;  %vm3481_vm6 = vcmp.lt.s32.totalorder %v2013_v23, 127  ;;  %v608_v34 = vsel %vm3482_vm4, %v1801_v13, %v1802_v53  ;;  %vm3484_vm10 = vnez %v3330_v45  ;;  %v1122_v44 = vrot.slane %v1118_v35, %v2009_v20 }
 0x1af   : > { %v588_v31 = vsel %vm3480_vm3, %v1797_v41, %v1796_v3  ;;  %v644_v30 = vsel %vm3481_vm6, %v1807_v12, %v1806_v56  ;;  %vm3483_vm14 = vmmov %vm3482_vm4  ;;  %vm3490_vm6 = vnez %v3371_v19  ;;  %v1553_v26 = vpack.c.bf16 %v608_v34, %v587_v17 }
 0x1b0   : > { %v609_v36 = vsel %vm3483_vm14, %v1802_v53, %v1801_v13  ;;  %vm3486_vm13 = vmpackc.low %vm3484_vm10, %vm3485_vm8  ;;  %vm1094_vm4 = vcmp.lt.s32.totalorder %v2013_v23, 98  ;;  %v1817_v14 = vunpack.i.h.bf16 %v1815_v42  ;;  %v1816_v58 = vunpack.i.l.bf16 %v1815_v42  ;;  %v1825_v37 = vpop.permute.xlu0 %1824 }
 0x1b1   : > { %1551 = vmatpush1.bf16.msk.msra.mxu1 %vm3486_vm13, %v1550_v6  ;;  %vm1552_vm3 = vmpackc.low %vm3488_vm1, %vm3487_vm12  ;;  %v1556_v60 = vpack.c.bf16 %v609_v36, %v588_v31  ;;  %v1812_v33 = vunpack.i.h.bf16 %v1810_v16  ;;  %v1811_v5 = vunpack.i.l.bf16 %v1810_v16  ;;  %vm3492_vm8 = vcmp.lt.s32.totalorder %v2013_v23, 127 }
 0x1b2   : > { %vm1555_vm15 = vmpackc.low %vm3490_vm6, %vm3489_vm0  ;;  %v643_v41 = vsel %vm3492_vm8, %v1806_v56, %v1807_v12  ;;  %v1559_v3 = vpack.c.bf16 %v644_v30, %v536_v2  ;;  %1554 = vmatprep.subr.msk.bf16.mxu1 %vm1552_vm3, %v1553_v26  ;;  %v1147_v38 = vrot.slane %v2963_v29, %v2011_v21  ;;  %vm3013_vm1 = vcmp.eq.s32.totalorder %v1105_v4, 1  ;;  %v1820_v2 = vpop.permute.xlu1 %1819 }
 0x1b3   : > { %vm3491_vm13 = vmand %vm2849_vm2, %vm3475_vm9  ;;  %vm3493_vm2 = vcmp.lt.s32.totalorder %v2013_v23, 112  ;;  %vm3494_vm9 = vcmp.lt.s32.totalorder %v2013_v23, 113  ;;  %vm3497_vm3 = vnez %v3384_v48  ;;  %vm3028_vm6 = vcmp.eq.s32.totalorder %v1101_v39, 1 }
 0x1b4   : > { %v2994_v45 = vsel %vm3491_vm13, 1, %v1863_v1  ;;  %v686_v27 = vsel %vm3493_vm2, %v1817_v14, %v1816_v58  ;;  %v665_v35 = vsel %vm3494_vm9, %v1812_v33, %v1811_v5  ;;  %vm3498_vm13 = vnez %v3382_v8  ;;  %v1830_v13 = vpop.permute.xlu0 %1829 }
 0x1b5   : > { %1557 = vmatpush1.bf16.msk.msra.mxu1 %vm1555_vm15, %v1556_v60  ;;  %vm3499_vm8 = vmpackc.low %vm3497_vm3, %vm3498_vm13  ;;  %vm3024_vm15 = vcmp.eq.s32.totalorder %v1126_v28, 1  ;;  %vm3032_vm9 = vcmp.eq.s32.totalorder %v1122_v44, 1  ;;  %v1168_v8 = vrot.slane %v2994_v45, %v2011_v21  ;;  %v1562_v48 = vpack.c.bf16 %v643_v41, %v535_v0 }
 0x1b6   : > { %1560 = vmatprep.subr.msk.bf16.mxu1 %vm3499_vm8, %v1559_v3  ;;  %v1827_v61 = vunpack.i.h.bf16 %v1825_v37  ;;  %v1826_v40 = vunpack.i.l.bf16 %v1825_v37  ;;  %vm3040_vm3 = vcmp.eq.s32.totalorder %v1189_v46, 1  ;;  %v1143_v6 = vrot.slane %v2963_v29, %v2009_v20  ;;  %vm3508_vm13 = vmmov %vm3493_vm2  ;;  %v1835_v53 = vpop.permute.xlu1 %1834 }
 0x1b7   : > { %v685_v10 = vsel %vm3508_vm13, %v1816_v58, %v1817_v14  ;;  %vm3509_vm8 = vcmp.lt.s32.totalorder %v2013_v23, 113  ;;  %v1565_v4 = vpack.c.bf16 %v686_v27, %v665_v35  ;;  %vm3050_vm0 = vcmp.eq.s32.totalorder %v1147_v38, 1  ;;  %v731_v35 = vld [vmem:[%s3189_s5] sm:$0xf] }
 0x1b8   : > { %v664_v52 = vsel %vm3509_vm8, %v1811_v5, %v1812_v33  ;;  %v1822_v62 = vunpack.i.h.bf16 %v1820_v2  ;;  %v1821_v0 = vunpack.i.l.bf16 %v1820_v2  ;;  %vm3512_vm2 = vcmp.lt.s32.totalorder %v2013_v23, 111  ;;  %vm3517_vm8 = vmpackc.low %vm2771_vm7, %vm2755_vm5  ;;  %v1840_v42 = vpop.permute.xlu0 %1839 }
 0x1b9   : > { %v706_v46 = vsel %vm3512_vm2, %v1826_v40, %v1827_v61  ;;  %vm3513_vm10 = vmmov %vm3512_vm2  ;;  %vm3514_vm12 = vnez %v3391_v15  ;;  %vm3515_vm13 = vnez %v3386_v25  ;;  %vm3518_vm2 = vnez %v3455_v55 }
 0x1ba   : > { %v707_v12 = vsel %vm3513_vm10, %v1827_v61, %v1826_v40  ;;  %vm3516_vm14 = vmpackc.low %vm3514_vm12, %vm3515_vm13  ;;  %v719_v17 = vsel %vm3518_vm2, %v706_v46, 0.0  ;;  %v1164_v15 = vrot.slane %v2994_v45, %v2009_v20  ;;  %v1185_v25 = vrot.slane %v2908_v18, %v2009_v20  ;;  %v1845_v60 = vpop.permute.xlu1 %1844 }
 0x1bb   : > { %1563 = vmatpush1.bf16.msk.msra.mxu1 %vm3516_vm14, %v1562_v48  ;;  %v720_v56 = vsel %vm2790_vm11, %v707_v12, 0.0  ;;  %v1568_v28 = vpack.c.bf16 %v685_v10, %v664_v52  ;;  %v1832_v11 = vunpack.i.h.bf16 %v1830_v13  ;;  %v1831_v39 = vunpack.i.l.bf16 %v1830_v13  ;;  %vm1634_vm13 = vmpackc.low %vm3024_vm15, %vm3013_vm1 }
 0x1bc   : > { %1566 = vmatprep.subr.msk.bf16.mxu1 %vm3517_vm8, %v1565_v4  ;;  %vm3076_vm11 = vcmp.eq.s32.totalorder %v1168_v8, 1  ;;  %v1837_v47 = vunpack.i.h.bf16 %v1835_v53  ;;  %v1836_v51 = vunpack.i.l.bf16 %v1835_v53  ;;  %v730_v31 = vpack.c.bf16 %v720_v56, %v720_v56  ;;  %vm1637_vm8 = vmpackc.low %vm3032_vm9, %vm3028_vm6  ;;  %v1408_v9 = vpop.permute.xlu0 %1407 }
 0x1bd   : > { %v729_v30 = vpack.c.bf16 %v719_v17, %v719_v17  ;;  %v1095_v55 = vsel %vm1094_vm4, %v1821_v0, %v1822_v62  ;;  %v1096_v34 = vsel %vm1094_vm4, %v1822_v62, %v1821_v0  ;;  %vm3521_vm5 = vcmp.lt.s32.totalorder %v2013_v23, 97 }
 0x1be   : > { %v1116_v20 = vsel %vm3521_vm5, %v1831_v39, %v1832_v11  ;;  %vm3522_vm7 = vmmov %vm3521_vm5  ;;  %vm3523_vm14 = vnez %v3433_v54  ;;  %vm3524_vm10 = vnez %v3427_v24  ;;  %vm3526_vm4 = vcmask 1043456  }
 0x1bf   : > { %v1117_v18 = vsel %vm3522_vm7, %v1832_v11, %v1831_v39  ;;  %vm3525_vm12 = vmpackc.low %vm3523_vm14, %vm3524_vm10  ;;  %v1638_v26 = vpack.c.bf16 %v1116_v20, %v1095_v55  ;;  %vm3102_vm2 = vcmp.eq.s32.totalorder %v1143_v6, 1  ;;  %vm3106_vm5 = vcmp.eq.s32.totalorder %v1164_v15, 1 }
 0x1c0   : > { %1569 = vmatpush1.bf16.msk.msra.mxu1 %vm3525_vm12, %v1568_v28  ;;  %v1635_v36 = vpack.c.bf16 %v1117_v18, %v1096_v34  ;;  %v1847_v16 = vunpack.i.h.bf16 %v1845_v60  ;;  %v1846_v44 = vunpack.i.l.bf16 %v1845_v60  ;;  %v1842_v45 = vunpack.i.h.bf16 %v1840_v42  ;;  %vm3533_vm7 = vmmov %vm3526_vm4  ;;  %v736_v6 = vpop.permute.xlu0 %735 }
 0x1c1   : > { %1570 = vmatprep.subr.msk.bf16.mxu1 %vm3526_vm4, %v730_v31  ;;  %v1841_v14 = vunpack.i.l.bf16 %v1840_v42  ;;  %vm3531_vm1 = vcmp.lt.s32.totalorder %v2013_v23, 96  ;;  %v744_v5 = vsel %vm3533_vm7, %v729_v30, 0  ;;  %vm3115_vm14 = vcmp.eq.s32.totalorder %v1185_v25, 1  ;;  %vm1643_vm6 = vmpackc.low %vm3106_vm5, %vm3102_vm2 }
 0x1c2   : > { %v1137_v58 = vsel %vm3531_vm1, %v1836_v51, %v1837_v47  ;;  %vm3532_vm15 = vmmov %vm3531_vm1  ;;  %1636 = vmatprep.subr.msk.bf16.mxu0 %vm1634_vm13, %v1635_v36  ;;  %vm3536_vm10 = vcmp.lt.s32.totalorder %v2013_v23, 94  ;;  %vm3537_vm12 = vcmp.lt.s32.totalorder %v2013_v23, 95  ;;  %v1414_v19 = vand.u32 %v1402_v57, %v1976_v7  ;;  %v1852_v7 = vld [vmem:[%s3191_s7] ss:$8 sps:$4 sm:$0x3f]   ;;  %v443_v57 = vpop.permute.xlu1 %442 }
 0x1c3   : > { %v1138_v33 = vsel %vm3532_vm15, %v1837_v47, %v1836_v51  ;;  %v1180_v3 = vsel %vm3536_vm10, %v1847_v16, %v1846_v44  ;;  %v1158_v38 = vsel %vm3537_vm12, %v1841_v14, %v1842_v45  ;;  %vm3538_vm4 = vmmov %vm3537_vm12  ;;  %1639 = vmatpush1.bf16.msk.msra.mxu0 %vm1637_vm8, %v1638_v26  ;;  %vm3543_vm8 = vcmask 23552  }
 0x1c4   : > { %v1159_v27 = vsel %vm3538_vm4, %v1842_v45, %v1841_v14  ;;  %758 = vmatpush1.bf16.msra.mxu1 %v744_v5  ;;  %vm1640_vm13 = vmpackc.low %vm3076_vm11, %vm3050_vm0  ;;  %v1193_v63 = vsel %vm3040_vm3, %v1180_v3, 0.0  ;;  %v1644_v37 = vpack.c.bf16 %v1158_v38, %v1137_v58  ;;  %vm3540_vm0 = vcmask 588800   ;;  %v1232_v12 = vpop.permute.xlu0 %1231 }
 0x1c5   : > { %v1641_v2 = vpack.c.bf16 %v1159_v27, %v1138_v33  ;;  %1419 = vmatprep.subr.bf16.mxu1 %v2925_v59  ;;  %vm3539_vm9 = vmmov %vm3536_vm10  ;;  %v1219_v22 = vpack.c.bf16 %v1193_v63, %v1193_v63  ;;  %v515_v48 = vadd.f32 %v2050_v49, %v443_v57 }
 0x1c6   : > { %v1179_v32 = vsel %vm3539_vm9, %v1846_v44, %v1847_v16  ;;  %vm3541_vm3 = vmmov %vm3533_vm7  ;;  %v1227_v46 = vpop.permute.xlu1 %1226 }
 0x1c7   : > { %v1192_v8 = vsel %vm3115_vm14, %v1179_v32, 0.0  ;;  %1571 = vmatmul.mubr.msk.bf16.vlgmr.msra.gmra.mrb[8].mxu1 %vm3540_vm0, %v731_v35  ;;  %1642 = vmatprep.subr.msk.bf16.mxu0 %vm1640_vm13, %v1641_v2  ;;  %vm3542_vm11 = vmmov %vm3541_vm3  ;;  %v531_v61 = vmax.f32 %v515_v48, 0.0 }
 0x1c8   : > { %v1218_v59 = vpack.c.bf16 %v1192_v8, %v1192_v8  ;;  %1645 = vmatpush1.bf16.msk.msra.mxu0 %vm1643_vm6, %v1644_v37  ;;  %1420 = vmatpush1.bf16.msra.mxu1 %v1414_v19 }
 0x1c9   : > { %1646 = vmatprep.subr.msk.bf16.mxu0 %vm3541_vm3, %v1219_v22  ;;  %1451 = vmatprep.mubr.bf16.mxu1 %v1863_v1  ;;  %v517_v1 = vadd.f32 %v2052_v50, %v443_v57  ;;  %1462 = vst [vmem:[%s3169_s12] sm:$0xff] %v531_v61 }
 0x1ca   : > { %v1247_v23 = vsel %vm3542_vm11, %v1218_v59, 0 }
 0x1cb   : > { %v532_v40 = vmax.f32 %v517_v1, 0.0 }
 0x1cc   : > { %1277 = vmatpush1.bf16.msra.mxu0 %v1247_v23 }
 0x1cd   : > { %1463 = vst [vmem:[%s3169_s12 + $0x8] sm:$0xff] %v532_v40 }
 0x1cf   : > { %1285 = vmatmul.mubr.bf16.vlgmr.msra.gmra.mrb[0].mxu0 %v1852_v7  ;;  %1648 = vmatmul.mubr.msk.bf16.vlgmr.msra.gmra.mrb[12].mxu1 %vm3543_vm8, %v1398_v43 }
 0x29a   : > { %v783_v10 = vpop.f32.mrb[8].mxu1 }
 0x29b   : > { %v784_v52 = vadd.f32 %v783_v10, %v736_v6  ;;  %v785_v49 = vpop.f32.mrb[9].mxu1 }
 0x29c   : > { %v786_v4 = vadd.f32 %v785_v49, %v736_v6  ;;  %v787_v50 = vpop.f32.mrb[10].mxu1 }
 0x29d   : > { %v790_v21 = vmax.f32 %v784_v52, 0.0  ;;  %v788_v62 = vpop.f32.mrb[11].mxu1 }
 0x29e   : > { %v791_v0 = vmax.f32 %v786_v4, 0.0 }
 0x29f   : > { %1464 = vst [vmem:[%s3169_s12 + $0x10] sm:$0xff] %v790_v21 }
 0x2a0   : > { %1465 = vst [vmem:[%s3169_s12 + $0x18] sm:$0xff] %v791_v0 }
 0x2a2   : > { %v1286_v56 = vpop.f32.mrb[0].mxu0  ;;  %v1453_v53 = vpop.f32.mrb[12].mxu1 }
 0x2a3   : > { %v1287_v13 = vadd.f32 %v1286_v56, %v1227_v46  ;;  %v1454_v17 = vadd.f32 %v1453_v53, %v1408_v9  ;;  %v1288_v15 = vpop.f32.mrb[1].mxu0  ;;  %v1455_v25 = vpop.f32.mrb[13].mxu1 }
 0x2a4   : > { %v1289_v28 = vadd.f32 %v1288_v15, %v1227_v46  ;;  %v1456_v11 = vadd.f32 %v1455_v25, %v1408_v9  ;;  %v1290_v39 = vpop.f32.mrb[2].mxu0  ;;  %v1457_v29 = vpop.f32.mrb[14].mxu1 }
 0x2a5   : > { %v1295_v47 = vmax.f32 %v1287_v13, 0.0  ;;  %v1460_v51 = vmax.f32 %v1454_v17, 0.0  ;;  %v1291_v31 = vadd.f32 %v1290_v39, %v1232_v12  ;;  %v1292_v30 = vpop.f32.mrb[3].mxu0  ;;  %v1458_v55 = vpop.f32.mrb[15].mxu1 }
 0x2a6   : > { %v1296_v34 = vmax.f32 %v1289_v28, 0.0  ;;  %v1461_v20 = vmax.f32 %v1456_v11, 0.0  ;;  %v1293_v18 = vadd.f32 %v1292_v30, %v1232_v12 }
 0x2a7   : > { %1466 = vst [vmem:[%s3169_s12 + $0x20] sm:$0xff] %v1295_v47  ;;  %v1472_v36 = vrot.slane %v1460_v51, 4  ;;  %v1297_v26 = vmax.f32 %v1291_v31, 0.0 }
 0x2a8   : > { %1467 = vst [vmem:[%s3169_s12 + $0x28] sm:$0xff] %v1296_v34  ;;  %v1473_v60 = vrot.slane %v1461_v20, 4  ;;  %v1298_v42 = vmax.f32 %v1293_v18, 0.0 }
 0x2a9   : > { %1476 = vst [vmem:[%s3169_s12 + $0x30] sm:$0xf0] %v1472_v36  ;;  %1468 = vst [vmem:[%s3169_s12 + $0x30] sm:$0xf] %v1297_v26 }
 0x2aa   : > { %1477 = vst [vmem:[%s3169_s12 + $0x38] sm:$0xf0] %v1473_v60  ;;  %1469 = vst [vmem:[%s3169_s12 + $0x38] sm:$0xf] %v1298_v42 }
 0x2ab PF: > { %s21_s17 = sadd.s32 1, %s1861_s17  }
 0x2ac   : > { %p18_p4 = scmp.ge.s32.totalorder %s21_s17, 4  }
 0x2ae   :  { %20 = sbr.rel (!%p18_p4) target bundleno = 1 (0x1), region = 94 }

</bundles_post_ra>
